<compile_context>
chip_gen: v6e
topology: v6e:2x2x1
jax: 0.10.0
libtpu: 0.0.40
codegen_flags: <defaults>
</compile_context>

<pallas_src>
import functools
import math

import jax
import jax.numpy as jnp
from jax.experimental import pallas as pl
from jax.experimental.pallas import tpu as pltpu


def _conv_gelu_kernel(x_ref, w_ref, b_ref, o_ref, *, K, stride, Ho, Wo):
    """One batch element per grid step: im2col + single MXU matmul + GELU."""
    Cin = x_ref.shape[-1]

    x = x_ref[0]              # (Hp, Wp, Cin), spatially pre-padded
    w = w_ref[...]            # (K*K*Cin, Cout_pad), lane-dense
    b = b_ref[...]            # (1, Cout_pad)

    # Build the im2col patch matrix with K*K contiguous slices and one lane
    # concatenate. Feature order is (kh-major, kw, cin), matching w's rows.
    taps = []
    for kh in range(K):
        for kw in range(K):
            if stride == 1:
                taps.append(x[kh:kh + Ho, kw:kw + Wo, :])
            else:
                # TODO(synk): for stride > 1, replace this strided in-VMEM
                # slice with a wrapper-side space-to-depth so in-kernel reads
                # stay contiguous.
                taps.append(x[kh:kh + (Ho - 1) * stride + 1:stride,
                              kw:kw + (Wo - 1) * stride + 1:stride, :])
    patches = jnp.concatenate(taps, axis=-1)          # (Ho, Wo, K*K*Cin)
    patches = patches.reshape(Ho * Wo, K * K * Cin)   # minor dim unchanged

    # Single matmul: (Ho*Wo, K*K*Cin) @ (K*K*Cin, Cout_pad), f32 accumulate.
    acc = jnp.dot(patches.astype(jnp.float32), w.astype(jnp.float32),
                  preferred_element_type=jnp.float32)
    acc = acc + b.astype(jnp.float32)

    # Exact (erf-based) GELU -- matches torch.nn.GELU() default -- computed on
    # lane-dense (Ho*Wo, Cout_pad) vregs.
    y = 0.5 * acc * (1.0 + jax.lax.erf(acc * (1.0 / math.sqrt(2.0))))

    o_ref[0] = y.astype(o_ref.dtype)                   # lane-dense store


def basic_conv(x_nchw, weight_oihw, bias, *, stride=1):
    """Equivalent of BasicConv(in,out,k,stride,bias=True,norm=False,relu=True)."""
    N, Cin, H, W = x_nchw.shape
    Cout, Cin_w, K, K2 = weight_oihw.shape
    assert Cin == Cin_w and K == K2

    pad = K // 2                      # matches PyTorch padding = kernel_size // 2
    Ho = (H + 2 * pad - K) // stride + 1
    Wo = (W + 2 * pad - K) // stride + 1
    Hp, Wp = H + 2 * pad, W + 2 * pad
    M = Ho * Wo

    LANES = 128
    Cout_p = -(-Cout // LANES) * LANES   # pad output channels to lane multiple

    # Wrapper glue (layout + spatial padding) in plain JAX.
    x_nhwc = jnp.transpose(x_nchw, (0, 2, 3, 1))
    x_pad = jnp.pad(x_nhwc, ((0, 0), (pad, pad), (pad, pad), (0, 0)))

    # (Cout, Cin, K, K) -> (K, K, Cin, Cout) -> (K*K*Cin, Cout) -> lane-pad.
    w_flat = jnp.transpose(weight_oihw, (2, 3, 1, 0)).reshape(K * K * Cin, Cout)
    w_flat = jnp.pad(w_flat, ((0, 0), (0, Cout_p - Cout)))
    b_flat = jnp.pad(bias, (0, Cout_p - Cout)).reshape(1, Cout_p)

    kernel = functools.partial(_conv_gelu_kernel, K=K, stride=stride, Ho=Ho, Wo=Wo)

    out = pl.pallas_call(
        kernel,
        out_shape=jax.ShapeDtypeStruct((N, M, Cout_p), x_nchw.dtype),
        grid_spec=pltpu.PrefetchScalarGridSpec(
            num_scalar_prefetch=0,
            grid=(N,),
            in_specs=[
                pl.BlockSpec((1, Hp, Wp, Cin), lambda n: (n, 0, 0, 0)),
                pl.BlockSpec((K * K * Cin, Cout_p), lambda n: (0, 0)),
                pl.BlockSpec((1, Cout_p), lambda n: (0, 0)),
            ],
            out_specs=pl.BlockSpec((1, M, Cout_p), lambda n: (n, 0, 0)),
        ),
        compiler_params=pltpu.CompilerParams(
            dimension_semantics=("parallel",),
            vmem_limit_bytes=32 * 1024 * 1024,
        ),
    )(x_pad, w_flat, b_flat)

    # Drop channel padding, back to PyTorch's NCHW convention.
    out = out[:, :, :Cout].reshape(N, Ho, Wo, Cout)
    return jnp.transpose(out, (0, 3, 1, 2))


def _reference(x_nchw, weight_oihw, bias, *, stride=1):
    K = weight_oihw.shape[-1]
    pad = K // 2
    y = jax.lax.conv_general_dilated(
        x_nchw, weight_oihw,
        window_strides=(stride, stride),
        padding=((pad, pad), (pad, pad)),
        dimension_numbers=("NCHW", "OIHW", "NCHW"),
    )
    y = y + bias[None, :, None, None]
    return 0.5 * y * (1.0 + jax.lax.erf(y / math.sqrt(2.0)))


if __name__ == "__main__":
    # BasicConv(in_channel=4, out_channel=8, kernel_size=3, stride=1,
    #           bias=True, norm=False, relu=True)
    N, Cin, H, W = 2, 4, 16, 16
    Cout, K, stride = 8, 3, 1

    key = jax.random.PRNGKey(0)
    kx, kw, kb = jax.random.split(key, 3)
    x = jax.random.normal(kx, (N, Cin, H, W), dtype=jnp.float32)
    fan_in = Cin * K * K
    bound = 1.0 / math.sqrt(fan_in)
    weight = jax.random.uniform(kw, (Cout, Cin, K, K), jnp.float32, -bound, bound)
    bias = jax.random.uniform(kb, (Cout,), jnp.float32, -bound, bound)

    out = basic_conv(x, weight, bias, stride=stride)
    out = jax.block_until_ready(out)

    ref = _reference(x, weight, bias, stride=stride)
    assert out.shape == ref.shape == (N, Cout, H, W)
    assert jnp.allclose(out, ref, rtol=1e-3, atol=1e-3), "mismatch vs. XLA conv reference"

    print("KERNEL_OK")
</pallas_src>

<mosaic_0001>
module attributes {stable_mosaic.version = 11 : i64} {
  func.func @_conv_gelu_kernel(%arg0: i32, %arg1: memref<1x18x18x4xf32, #tpu.memory_space<vmem>>, %arg2: memref<36x128xf32, #tpu.memory_space<vmem>>, %arg3: memref<1x128xf32, #tpu.memory_space<vmem>>, %arg4: memref<1x256x128xf32, #tpu.memory_space<vmem>>) attributes {dimension_semantics = [#tpu.dimension_semantics<parallel>], iteration_bounds = array<i64: 2>, scalar_prefetch = 0 : i64, scratch_operands = 0 : i64, tpu.core_type = #tpu.core_type<tc>, window_params = [{transform_indices = @transform_0, window_bounds = array<i64: 1, 18, 18, 4>}, {pipeline_mode = #tpu.pipeline_mode<synchronous>, transform_indices = @transform_1, window_bounds = array<i64: 36, 128>}, {pipeline_mode = #tpu.pipeline_mode<synchronous>, transform_indices = @transform_2, window_bounds = array<i64: 1, 128>}, {transform_indices = @transform_3, window_bounds = array<i64: 1, 256, 128>}]} {
    %c0 = arith.constant 0 : index
    %c0_0 = arith.constant 0 : index
    %c0_1 = arith.constant 0 : index
    %c0_2 = arith.constant 0 : index
    %0 = vector.load %arg1[%c0, %c0_0, %c0_1, %c0_2] : memref<1x18x18x4xf32, #tpu.memory_space<vmem>>, vector<1x18x18x4xf32>
    %1 = vector.shape_cast %0 : vector<1x18x18x4xf32> to vector<18x18x4xf32>
    %c0_3 = arith.constant 0 : index
    %c0_4 = arith.constant 0 : index
    %2 = vector.load %arg2[%c0_3, %c0_4] : memref<36x128xf32, #tpu.memory_space<vmem>>, vector<36x128xf32>
    %c0_5 = arith.constant 0 : index
    %c0_6 = arith.constant 0 : index
    %3 = vector.load %arg3[%c0_5, %c0_6] : memref<1x128xf32, #tpu.memory_space<vmem>>, vector<1x128xf32>
    %4 = vector.extract_strided_slice %1 {offsets = [0, 0, 0], sizes = [16, 16, 4], strides = [1, 1, 1]} : vector<18x18x4xf32> to vector<16x16x4xf32>
    %5 = vector.extract_strided_slice %1 {offsets = [0, 1, 0], sizes = [16, 16, 4], strides = [1, 1, 1]} : vector<18x18x4xf32> to vector<16x16x4xf32>
    %6 = vector.extract_strided_slice %1 {offsets = [0, 2, 0], sizes = [16, 16, 4], strides = [1, 1, 1]} : vector<18x18x4xf32> to vector<16x16x4xf32>
    %7 = vector.extract_strided_slice %1 {offsets = [1, 0, 0], sizes = [16, 16, 4], strides = [1, 1, 1]} : vector<18x18x4xf32> to vector<16x16x4xf32>
    %8 = vector.extract_strided_slice %1 {offsets = [1, 1, 0], sizes = [16, 16, 4], strides = [1, 1, 1]} : vector<18x18x4xf32> to vector<16x16x4xf32>
    %9 = vector.extract_strided_slice %1 {offsets = [1, 2, 0], sizes = [16, 16, 4], strides = [1, 1, 1]} : vector<18x18x4xf32> to vector<16x16x4xf32>
    %10 = vector.extract_strided_slice %1 {offsets = [2, 0, 0], sizes = [16, 16, 4], strides = [1, 1, 1]} : vector<18x18x4xf32> to vector<16x16x4xf32>
    %11 = vector.extract_strided_slice %1 {offsets = [2, 1, 0], sizes = [16, 16, 4], strides = [1, 1, 1]} : vector<18x18x4xf32> to vector<16x16x4xf32>
    %12 = vector.extract_strided_slice %1 {offsets = [2, 2, 0], sizes = [16, 16, 4], strides = [1, 1, 1]} : vector<18x18x4xf32> to vector<16x16x4xf32>
    %13 = tpu.concatenate %4, %5, %6, %7, %8, %9, %10, %11, %12 in 2 : vector<16x16x4xf32>, vector<16x16x4xf32>, vector<16x16x4xf32>, vector<16x16x4xf32>, vector<16x16x4xf32>, vector<16x16x4xf32>, vector<16x16x4xf32>, vector<16x16x4xf32>, vector<16x16x4xf32> -> vector<16x16x36xf32>
    %14 = vector.shape_cast %13 : vector<16x16x36xf32> to vector<256x36xf32>
    %cst = arith.constant dense<0.000000e+00> : vector<256x128xf32>
    %15 = tpu.matmul %14, %2, %cst {dimension_numbers = #tpu.dot_dimension_numbers<[1], [0], [0], [1], [0, 0, 1, 1], [], []>} : vector<256x36xf32>, vector<36x128xf32>, vector<256x128xf32> -> vector<256x128xf32>
    %16 = vector.broadcast %3 : vector<1x128xf32> to vector<256x128xf32>
    %17 = arith.addf %15, %16 : vector<256x128xf32>
    %cst_7 = arith.constant 5.000000e-01 : f32
    %18 = vector.broadcast %cst_7 : f32 to vector<256x128xf32>
    %19 = arith.mulf %18, %17 : vector<256x128xf32>
    %cst_8 = arith.constant 0.707106769 : f32
    %20 = vector.broadcast %cst_8 : f32 to vector<256x128xf32>
    %21 = arith.mulf %17, %20 : vector<256x128xf32>
    %22 = math.erf %21 : vector<256x128xf32>
    %cst_9 = arith.constant 1.000000e+00 : f32
    %23 = vector.broadcast %cst_9 : f32 to vector<256x128xf32>
    %24 = arith.addf %23, %22 : vector<256x128xf32>
    %25 = arith.mulf %19, %24 : vector<256x128xf32>
    %c0_10 = arith.constant 0 : index
    %c0_11 = arith.constant 0 : index
    %c0_12 = arith.constant 0 : index
    %26 = vector.load %arg4[%c0_10, %c0_11, %c0_12] : memref<1x256x128xf32, #tpu.memory_space<vmem>>, vector<1x256x128xf32>
    %27 = vector.shape_cast %26 : vector<1x256x128xf32> to vector<256x128xf32>
    %28 = vector.shape_cast %25 : vector<256x128xf32> to vector<1x256x128xf32>
    tpu.vector_store %arg4[%c0_10, %c0_11, %c0_12], %28 {strides = array<i32>} : memref<1x256x128xf32, #tpu.memory_space<vmem>>, vector<1x256x128xf32>,
    return
  }
  func.func @transform_0(%arg0: i32) -> (i32, i32, i32, i32) {
    %c0_i32 = arith.constant 0 : i32
    %c0_i32_0 = arith.constant 0 : i32
    %c0_i32_1 = arith.constant 0 : i32
    %c0_i32_2 = arith.constant 0 : i32
    return %arg0, %c0_i32, %c0_i32_0, %c0_i32_1 : i32, i32, i32, i32
  }
  func.func @transform_1(%arg0: i32) -> (i32, i32) {
    %c0_i32 = arith.constant 0 : i32
    %c0_i32_0 = arith.constant 0 : i32
    %c0_i32_1 = arith.constant 0 : i32
    return %c0_i32, %c0_i32_0 : i32, i32
  }
  func.func @transform_2(%arg0: i32) -> (i32, i32) {
    %c0_i32 = arith.constant 0 : i32
    %c0_i32_0 = arith.constant 0 : i32
    %c0_i32_1 = arith.constant 0 : i32
    return %c0_i32, %c0_i32_0 : i32, i32
  }
  func.func @transform_3(%arg0: i32) -> (i32, i32, i32) {
    %c0_i32 = arith.constant 0 : i32
    %c0_i32_0 = arith.constant 0 : i32
    %c0_i32_1 = arith.constant 0 : i32
    return %arg0, %c0_i32, %c0_i32_0 : i32, i32, i32
  }
}

</mosaic_0001>

<bundles_post_ra>
// kernel: tpu_custom_call.1
= control target key start
LH: loop header
LB: loop body
LE: loop exit
PB: predicated region body
PF: predicated region fallthrough
CT: control target
= control target key end

     0   :  { %8 = vsyncpa [#allocation3], 0  ;;  %s4342_s0 = inlined_call_operand.vmem [shape: f32[2,18,18,4], index: 0, kind: input, shape index: {}]   ;;  %s4343_s1 = inlined_call_operand.vmem [shape: f32[36,128], index: 1, kind: input, shape index: {}]   ;;  %s4344_s2 = inlined_call_operand.vmem [shape: f32[1,128], index: 2, kind: input, shape index: {}]   ;;  %s4345_s3 = inlined_call_operand.hbm [shape: f32[2,256,128], index: 3, kind: output, shape index: {}]  }
   0x1   :  { %10 = vsyncpa [#allocation3 + $0x1], 0  ;;  %s2472_s12 = smov 0   ;;  %s2474_s13 = smov 0  }
   0x2   :  { %s2476_s14 = smov 0   ;;  %s2478_s15 = smov 0  }
   0x3 LB: > { %s2493_s16 = sadd.s32 4294967295, %s2440_s15   ;;  %s2097_s17 = sadd.s32 4294967294, %s2440_s15   ;;  %s2440_s15 = sphi %s2478_s15, %s4597_s15   ;;  %s2436_s14 = sphi %s2476_s14, %s4596_s14   ;;  %s2432_s13 = sphi %s2474_s13, %s4595_s13   ;;  %s2428_s12 = sphi %s2472_s12, %s4594_s12  }
   0x4   : > { %s2497_s18 = sadd.s32 1, %s2440_s15   ;;  %s91_s19 = sadd.s32 1, %s2436_s14 }
   0x5   : > { %s88_s20 = ssub.s32 %s2440_s15, %s2497_s18  ;;  %p101_p0 = scmp.ne.s32.totalorder %s2436_s14, %s2432_s13 }
   0x6   : > { %p89_p1 = scmp.eq.s32.totalorder %s88_s20, 0  ;;  %p102_p2 = scmp.eq.s32.totalorder %s2493_s16, 1 }
   0x7   : > { %p107_p3 = scmp.ne.s32.totalorder %s2432_s13, %s2428_s12  ;;  %p108_p4 = scmp.eq.s32.totalorder %s2097_s17, 1 }
   0x8   : > { %s2508_s21 = scalar_select %p89_p1, %s2436_s14, %s91_s19  }
   0x9   : > { %p2510_p5 = por %p102_p2, %p101_p0  ;;  %p2514_p6 = por %p108_p4, %p107_p3 }
   0xa   : > { %p2100_p7 = scmp.ge.s32.totalorder %s2440_s15, 1  ;;  %p140_p8 = scmp.lt.s32.totalorder %s2440_s15, 3 }
   0xc   : > { %p141_p9 = pnand %p2100_p7, %p140_p8 }
   0xe   : > { %144 = sbr.rel (%p141_p9) target bundleno = 886 (0x376), region = 32 }
  0x13   : > { %p164_p10 = scmp.lt.s32.totalorder %s2493_s16, 1  ;;  %vm277_vm0 = vcmask 1046528   ;;  %s2442_s29 = smov 4   ;;  %vm454_vm1 = vcmask 1045504   ;;  %vm1233_vm2 = vcmask 31744   ;;  %vm1266_vm3 = vcmask 64512  }
  0x14   : > { %s2443_s30 = smov 8   ;;  %s2444_s4 = smov 12   ;;  %vm1600_vm4 = vcmask 1043456   ;;  %vm1299_vm5 = vcmask 97280   ;;  %vm1332_vm6 = vcmask 130048   ;;  %vm1365_vm7 = vcmask 162816  }
  0x15   : > { %s165_s24 = scalar_select %p164_p10, %s2493_s16, 1  ;;  %vm1398_vm8 = vcmask 195584   ;;  %vm1431_vm9 = vcmask 228352   ;;  %vm1464_vm10 = vcmask 261120   ;;  %vm1503_vm11 = vcmask 293888  }
  0x16   : > { %s2445_s5 = smov 16   ;;  %s2446_s6 = smov 20  }
  0x17   : > { %s2248_s25 = smul.u32 432, %s165_s24  ;;  %s2447_s7 = smov 24  }
  0x18   : > { %s2448_s17 = smov 28   ;;  %s2142_s8 = sshll.u32 %s2493_s16, 12 }
  0x19   : > { %s2525_s28 = scalar_lea.vmem %s4342_s0, %s2248_s25  ;;  %s2450_s20 = smov [#allocation2]  }
  0x1a   : > { %v2528_v0 = vld [vmem:[%s2525_s28 + $0x18] sm:$0xff]  ;;  %v2531_v1 = vld [vmem:[%s2525_s28 + $0x20] sm:$0xff]  ;;  %v2539_v5 = vld [vmem:[%s2525_s28 + $0x8] sm:$0xff]  ;;  %s2384_s24 = sshll.u32 %s2450_s20, 4  ;;  %s2385_s24 = int_to_ptr.vmem [resolvable:$false] %s2384_s24 }
  0x1b   : > { %v2534_v2 = vld [vmem:[%s2525_s28] sm:$0xff]  ;;  %v283_v3 = vrot.slane %v2528_v0, 1  ;;  %v284_v4 = vrot.slane %v2531_v1, 1  ;;  %v2543_v7 = vld [vmem:[%s2525_s28 + $0x28] sm:$0x3]  ;;  %v279_v8 = vrot.slane %v2539_v5, 1 }
  0x1c   : > { %v278_v6 = vrot.slane %v2534_v2, 1  ;;  %v286_v9 = vrot.slane %v2543_v7, 1  ;;  %v2548_v10 = vld [vmem:[%s2525_s28 + $0x10] sm:$0x3]  ;;  %v2551_v11 = vld [vmem:[%s2525_s28 + $0x38] sm:$0xff]  ;;  %v2581_v24 = vld [vmem:[%s2525_s28 + $0x48] sm:$0xff] }
  0x1d   : > { %v2554_v12 = vsel %vm277_vm0, %v283_v3, %v284_v4  ;;  %v281_v13 = vrot.slane %v2548_v10, 1  ;;  %v2558_v14 = vld [vmem:[%s2525_s28 + $0x40] sm:$0x3]  ;;  %v2561_v15 = vld [vmem:[%s2525_s28 + $0x30] sm:$0xff]  ;;  %v289_v18 = vrot.slane %v2551_v11, 1  ;;  %v293_v29 = vrot.slane %v2581_v24, 1 }
  0x1e   : > { %362 = vrot.lane.b32.xlu1 %v2554_v12, %s2442_s29  ;;  %v280_v16 = vsel %vm277_vm0, %v278_v6, %v279_v8  ;;  %v2568_v17 = vsel %vm277_vm0, %v284_v4, %v286_v9  ;;  %v291_v19 = vrot.slane %v2558_v14, 1  ;;  %v288_v21 = vrot.slane %v2561_v15, 1  ;;  %v2575_v22 = vld [vmem:[%s2525_s28 + $0x50] sm:$0xff]  ;;  %v2578_v23 = vld [vmem:[%s2525_s28 + $0x58] sm:$0x3]  ;;  %v2596_v30 = vld [vmem:[%s2525_s28 + $0x68] sm:$0xff] }
  0x1f   : > { %358 = vrot.lane.b32.xlu0 %v280_v16, %s2442_s29  ;;  %v282_v20 = vsel %vm277_vm0, %v279_v8, %v281_v13  ;;  %v294_v26 = vrot.slane %v2575_v22, 1  ;;  %v296_v27 = vrot.slane %v2578_v23, 1  ;;  %v2599_v31 = vld [vmem:[%s2525_s28 + $0x70] sm:$0x3]  ;;  %v2602_v32 = vld [vmem:[%s2525_s28 + $0x60] sm:$0xff]  ;;  %v299_v34 = vrot.slane %v2596_v30, 1 }
  0x20   : > { %v2587_v25 = vsel %vm277_vm0, %v289_v18, %v291_v19  ;;  %v2592_v28 = vsel %vm277_vm0, %v288_v21, %v289_v18  ;;  %v301_v35 = vrot.slane %v2599_v31, 1  ;;  %v298_v37 = vrot.slane %v2602_v32, 1  ;;  %v2618_v38 = vld [vmem:[%s2525_s28 + $0x80] sm:$0xff]  ;;  %v2621_v39 = vld [vmem:[%s2525_s28 + $0x88] sm:$0x3]  ;;  %v2624_v40 = vld [vmem:[%s2525_s28 + $0x78] sm:$0xff] }
  0x21   : > { %v2609_v33 = vsel %vm277_vm0, %v294_v26, %v296_v27  ;;  %v2614_v36 = vsel %vm277_vm0, %v293_v29, %v294_v26  ;;  %v304_v42 = vrot.slane %v2618_v38, 1  ;;  %v306_v43 = vrot.slane %v2621_v39, 1  ;;  %v2640_v46 = vld [vmem:[%s2525_s28 + $0x98] sm:$0xff]  ;;  %v2643_v47 = vld [vmem:[%s2525_s28 + $0xa0] sm:$0x3]  ;;  %v2646_v48 = vld [vmem:[%s2525_s28 + $0x90] sm:$0xff] }
  0x22   : > { %364 = vrot.lane.b32.xlu1 %v2568_v17, %s2442_s29  ;;  %4448 = vst [vmem:[#allocation5_spill] sm:$0xff] %v2609_v33  ;;  %4449 = vst [vmem:[#allocation6_spill] sm:$0xff] %v2614_v36  ;;  %v2631_v41 = vsel %vm277_vm0, %v299_v34, %v301_v35  ;;  %v2636_v44 = vsel %vm277_vm0, %v298_v37, %v299_v34  ;;  %v303_v45 = vrot.slane %v2624_v40, 1  ;;  %v309_v50 = vrot.slane %v2640_v46, 1  ;;  %v2662_v54 = vld [vmem:[%s2525_s28 + $0xb0] sm:$0xff]  ;;  %v2668_v56 = vld [vmem:[%s2525_s28 + $0xa8] sm:$0xff] }
  0x23   : > { %360 = vrot.lane.b32.xlu0 %v282_v20, %s2442_s29  ;;  %4450 = vst [vmem:[#allocation7_spill] sm:$0xff] %v2631_v41  ;;  %4451 = vst [vmem:[#allocation8_spill] sm:$0xff] %v2636_v44  ;;  %v2653_v49 = vsel %vm277_vm0, %v304_v42, %v306_v43  ;;  %v311_v51 = vrot.slane %v2643_v47, 1  ;;  %v308_v53 = vrot.slane %v2646_v48, 1  ;;  %v2665_v55 = vld [vmem:[%s2525_s28 + $0xb8] sm:$0x3] }
  0x24   : > { %4452 = vst [vmem:[#allocation9_spill] sm:$0xff] %v2653_v49  ;;  %v2658_v52 = vsel %vm277_vm0, %v303_v45, %v304_v42  ;;  %v314_v58 = vrot.slane %v2662_v54, 1  ;;  %v316_v59 = vrot.slane %v2665_v55, 1  ;;  %v313_v61 = vrot.slane %v2668_v56, 1  ;;  %v2684_v62 = vld [vmem:[%s2525_s28 + $0xc8] sm:$0xff]  ;;  %v2690_v3 = vld [vmem:[%s2525_s28 + $0xc0] sm:$0xff] }
  0x25   : > { %4453 = vst [vmem:[#allocation10_spill] sm:$0xff] %v2658_v52  ;;  %v2675_v57 = vsel %vm277_vm0, %v309_v50, %v311_v51  ;;  %v2680_v60 = vsel %vm277_vm0, %v308_v53, %v309_v50  ;;  %v2687_v63 = vld [vmem:[%s2525_s28 + $0xd0] sm:$0x3]  ;;  %v319_v6 = vrot.slane %v2684_v62, 1  ;;  %v318_v13 = vrot.slane %v2690_v3, 1  ;;  %v2706_v16 = vld [vmem:[%s2525_s28 + $0xe0] sm:$0xff] }
  0x26   : > { %368 = vrot.lane.b32.xlu1 %v2587_v25, %s2442_s29  ;;  %4454 = vst [vmem:[#allocation11_spill] sm:$0xff] %v2675_v57  ;;  %4455 = vst [vmem:[#allocation12_spill] sm:$0xff] %v2680_v60  ;;  %v2697_v4 = vsel %vm277_vm0, %v314_v58, %v316_v59  ;;  %v321_v8 = vrot.slane %v2687_v63, 1  ;;  %v2702_v9 = vsel %vm277_vm0, %v313_v61, %v314_v58  ;;  %v2709_v18 = vld [vmem:[%s2525_s28 + $0xe8] sm:$0x3]  ;;  %v2712_v19 = vld [vmem:[%s2525_s28 + $0xd8] sm:$0xff] }
  0x27   : > { %366 = vrot.lane.b32.xlu0 %v2592_v28, %s2442_s29  ;;  %4456 = vst [vmem:[#allocation13_spill] sm:$0xff] %v2697_v4  ;;  %4457 = vst [vmem:[#allocation14_spill] sm:$0xff] %v2702_v9  ;;  %v324_v21 = vrot.slane %v2706_v16, 1  ;;  %v326_v26 = vrot.slane %v2709_v18, 1  ;;  %v2724_v27 = vsel %vm277_vm0, %v318_v13, %v319_v6  ;;  %v323_v29 = vrot.slane %v2712_v19, 1  ;;  %v2728_v34 = vld [vmem:[%s2525_s28 + $0xf8] sm:$0xff] }
  0x28   : > { %v2719_v20 = vsel %vm277_vm0, %v319_v6, %v321_v8  ;;  %4459 = vst [vmem:[#allocation16_spill] sm:$0xff] %v2724_v27  ;;  %v2731_v35 = vld [vmem:[%s2525_s28 + $0x100] sm:$0x3]  ;;  %v2734_v37 = vld [vmem:[%s2525_s28 + $0xf0] sm:$0xff]  ;;  %v329_v43 = vrot.slane %v2728_v34, 1  ;;  %v2756_v59 = vld [vmem:[%s2525_s28 + $0x108] sm:$0xff] }
  0x29   : > { %4458 = vst [vmem:[#allocation15_spill] sm:$0xff] %v2719_v20  ;;  %v2741_v42 = vsel %vm277_vm0, %v324_v21, %v326_v26  ;;  %v331_v45 = vrot.slane %v2731_v35, 1  ;;  %v2746_v50 = vsel %vm277_vm0, %v323_v29, %v324_v21  ;;  %v328_v51 = vrot.slane %v2734_v37, 1  ;;  %v2750_v53 = vld [vmem:[%s2525_s28 + $0x110] sm:$0xff]  ;;  %v2753_v58 = vld [vmem:[%s2525_s28 + $0x118] sm:$0x3] }
  0x2a   : > { %372 = vrot.lane.b32.xlu1 %v2609_v33, %s2442_s29  ;;  %4460 = vst [vmem:[#allocation17_spill] sm:$0xff] %v2741_v42  ;;  %v334_v6 = vrot.slane %v2750_v53, 1  ;;  %v336_v8 = vrot.slane %v2753_v58, 1  ;;  %v333_v21 = vrot.slane %v2756_v59, 1  ;;  %v2772_v26 = vld [vmem:[%s2525_s28 + $0x128] sm:$0xff]  ;;  %v2822_v33 = vld [vmem:[%s2525_s28 + $0x150] sm:$0xff] }
  0x2b   : > { %370 = vrot.lane.b32.xlu0 %v2614_v36, %s2442_s29  ;;  %v2763_v61 = vsel %vm277_vm0, %v329_v43, %v331_v45  ;;  %v2768_v13 = vsel %vm277_vm0, %v328_v51, %v329_v43  ;;  %v2775_v29 = vld [vmem:[%s2525_s28 + $0x130] sm:$0x3]  ;;  %v339_v43 = vrot.slane %v2772_v26, 1  ;;  %s2386_s25 = scalar_lea.vmem %s2385_s24, 8192 }
  0x2c   : > { %4461 = vst [vmem:[#allocation18_spill] sm:$0xff] %v2763_v61  ;;  %4462 = vst [vmem:[#allocation19_spill] sm:$0xff] %v2768_v13  ;;  %v2785_v45 = vsel %vm277_vm0, %v334_v6, %v336_v8  ;;  %v341_v51 = vrot.slane %v2775_v29, 1 }
  0x2d   : > { %4463 = vst [vmem:[#allocation20_spill] sm:$0xff] %v2785_v45 }
  0x2e   : > { %376 = vrot.lane.b32.xlu1 %v2631_v41, %s2442_s29  ;;  %v2807_v8 = vsel %vm277_vm0, %v339_v43, %v341_v51  ;;  %v2816_v41 = vld [vmem:[%s2525_s28 + $0x158] sm:$0xff] }
  0x2f   : > { %374 = vrot.lane.b32.xlu0 %v2636_v44, %s2442_s29  ;;  %4465 = vst [vmem:[#allocation22_spill] sm:$0xff] %v2807_v8  ;;  %v2819_v44 = vld [vmem:[%s2525_s28 + $0x160] sm:$0x3] }
  0x32   : > { %380 = vrot.lane.b32.xlu1 %v2653_v49, %s2442_s29 }
  0x33   : > { %378 = vrot.lane.b32.xlu0 %v2658_v52, %s2442_s29 }
  0x36   : > { %384 = vrot.lane.b32.xlu1 %v2675_v57, %s2442_s29  ;;  %v2797_v57 = vld [vmem:[%s2525_s28 + $0x148] sm:$0x3] }
  0x37   : > { %382 = vrot.lane.b32.xlu0 %v2680_v60, %s2442_s29  ;;  %v2800_v60 = vld [vmem:[%s2525_s28 + $0x138] sm:$0xff] }
  0x38   : > { %v343_v52 = vrot.slane %v2800_v60, 1 }
  0x3a   : > { %388 = vrot.lane.b32.xlu1 %v2697_v4, %s2442_s29 }
  0x3b   : > { %386 = vrot.lane.b32.xlu0 %v2702_v9, %s2442_s29  ;;  %v2794_v9 = vld [vmem:[%s2525_s28 + $0x140] sm:$0xff] }
  0x3e   : > { %392 = vrot.lane.b32.xlu1 %v2719_v20, %s2442_s29  ;;  %v2778_v20 = vld [vmem:[%s2525_s28 + $0x120] sm:$0xff] }
  0x3f   : > { %390 = vrot.lane.b32.xlu0 %v2724_v27, %s2442_s29  ;;  %v2790_v27 = vsel %vm277_vm0, %v333_v21, %v334_v6  ;;  %v338_v4 = vrot.slane %v2778_v20, 1  ;;  %v344_v6 = vrot.slane %v2794_v9, 1  ;;  %v346_v21 = vrot.slane %v2797_v57, 1 }
  0x40   : > { %4464 = vst [vmem:[#allocation21_spill] sm:$0xff] %v2790_v27 }
  0x41   : > { %v2812_v49 = vsel %vm277_vm0, %v338_v4, %v339_v43  ;;  %v2829_v51 = vsel %vm277_vm0, %v344_v6, %v346_v21  ;;  %v349_v4 = vrot.slane %v2816_v41, 1  ;;  %v351_v43 = vrot.slane %v2819_v44, 1 }
  0x42   : > { %396 = vrot.lane.b32.xlu1 %v2741_v42, %s2442_s29  ;;  %4466 = vst [vmem:[#allocation23_spill] sm:$0xff] %v2812_v49  ;;  %4467 = vst [vmem:[#allocation24_spill] sm:$0xff] %v2829_v51 }
  0x43   : > { %394 = vrot.lane.b32.xlu0 %v2746_v50, %s2442_s29  ;;  %v2851_v21 = vsel %vm277_vm0, %v349_v4, %v351_v43  ;;  %v456_v43 = vrot.slane %v2539_v5, 2  ;;  %v463_v5 = vrot.slane %v2543_v7, 2  ;;  %v465_v7 = vrot.slane %v2561_v15, 2 }
  0x44   : > { %4471 = vst [vmem:[#allocation28_spill] sm:$0xff] %v2851_v21 }
  0x46   : > { %400 = vrot.lane.b32.xlu1 %v2763_v61, %s2442_s29  ;;  %v2838_v61 = vld [vmem:[%s2525_s28 + $0x170] sm:$0xff] }
  0x47   : > { %398 = vrot.lane.b32.xlu0 %v2768_v13, %s2442_s29  ;;  %4469 = vst [vmem:[#allocation26_spill] sm:$0xff] %v2838_v61  ;;  %v2841_v13 = vld [vmem:[%s2525_s28 + $0x178] sm:$0x3] }
  0x4a   : > { %404 = vrot.lane.b32.xlu1 %v2785_v45, %s2442_s29  ;;  %v2834_v45 = vsel %vm277_vm0, %v343_v52, %v344_v6  ;;  %v354_v52 = vrot.slane %v2838_v61, 1  ;;  %v356_v6 = vrot.slane %v2841_v13, 1 }
  0x4b   : > { %402 = vrot.lane.b32.xlu0 %v2790_v27, %s2442_s29  ;;  %4468 = vst [vmem:[#allocation25_spill] sm:$0xff] %v2834_v45  ;;  %v348_v27 = vrot.slane %v2822_v33, 1 }
  0x4e   : > { %408 = vrot.lane.b32.xlu1 %v2807_v8, %s2442_s29  ;;  %v2844_v8 = vld [vmem:[%s2525_s28 + $0x168] sm:$0xff] }
  0x4f   : > { %406 = vrot.lane.b32.xlu0 %v2812_v49, %s2442_s29  ;;  %4470 = vst [vmem:[#allocation27_spill] sm:$0xff] %v2844_v8  ;;  %v2856_v49 = vsel %vm277_vm0, %v348_v27, %v349_v4  ;;  %v353_v42 = vrot.slane %v2844_v8, 1  ;;  %v455_v27 = vrot.slane %v2534_v2, 2 }
  0x50   : > { %4472 = vst [vmem:[#allocation29_spill] sm:$0xff] %v2856_v49 }
  0x51   : > { %v2869_v36 = vsel %vm277_vm0, %v353_v42, %v354_v52  ;;  %v460_v42 = vrot.slane %v2528_v0, 2 }
  0x52   : > { %412 = vrot.lane.b32.xlu1 %v2829_v51, %s2442_s29  ;;  %v2864_v51 = vsel %vm277_vm0, %v354_v52, %v356_v6  ;;  %4474 = vst [vmem:[#allocation31_spill] sm:$0xff] %v2869_v36  ;;  %v461_v6 = vrot.slane %v2531_v1, 2  ;;  %v466_v52 = vrot.slane %v2551_v11, 2 }
  0x53   : > { %410 = vrot.lane.b32.xlu0 %v2834_v45, %s2442_s29  ;;  %4473 = vst [vmem:[#allocation30_spill] sm:$0xff] %v2864_v51  ;;  %v458_v45 = vrot.slane %v2548_v10, 2  ;;  %v457_v10 = vsel %vm454_vm1, %v455_v27, %v456_v43  ;;  %v471_v27 = vrot.slane %v2575_v22, 2 }
  0x54   : > { %v2884_v2 = vsel %vm454_vm1, %v461_v6, %v463_v5 }
  0x55   : > { %v459_v4 = vsel %vm454_vm1, %v456_v43, %v458_v45  ;;  %v468_v45 = vrot.slane %v2558_v14, 2  ;;  %v2902_v14 = vsel %vm454_vm1, %v465_v7, %v466_v52  ;;  %v481_v7 = vrot.slane %v2618_v38, 2 }
  0x56   : > { %416 = vrot.lane.b32.xlu1 %v2851_v21, %s2442_s29  ;;  %v493_v21 = vrot.slane %v2665_v55, 2 }
  0x57   : > { %414 = vrot.lane.b32.xlu0 %v2856_v49, %s2442_s29  ;;  %v2897_v43 = vsel %vm454_vm1, %v466_v52, %v468_v45  ;;  %v475_v52 = vrot.slane %v2602_v32, 2  ;;  %v498_v49 = vrot.slane %v2687_v63, 2 }
  0x58   : > { %4475 = vst [vmem:[#allocation32_spill] sm:$0xff] %v2897_v43 }
  0x5a   : > { %420 = vrot.lane.b32.xlu1 %v2864_v51, %s2442_s29  ;;  %v2889_v51 = vsel %vm454_vm1, %v460_v42, %v461_v6  ;;  %v470_v6 = vrot.slane %v2581_v24, 2  ;;  %v478_v42 = vrot.slane %v2599_v31, 2 }
  0x5b   : > { %418 = vrot.lane.b32.xlu0 %v2869_v36, %s2442_s29  ;;  %v488_v36 = vrot.slane %v2643_v47, 2  ;;  %s2449_s29 = smov 32  }
  0x5e   : > { %537 = vrot.lane.b32.xlu1 %v459_v4, %s2443_s30  ;;  %v473_v4 = vrot.slane %v2578_v23, 2  ;;  %v2915_v23 = vsel %vm454_vm1, %v470_v6, %v471_v27 }
  0x5f   : > { %535 = vrot.lane.b32.xlu0 %v457_v10, %s2443_s30  ;;  %v476_v10 = vrot.slane %v2596_v30, 2  ;;  %4477 = vst [vmem:[#allocation34_spill] sm:$0xff] %v2915_v23 }
  0x60   : > { %v2910_v5 = vsel %vm454_vm1, %v471_v27, %v473_v4  ;;  %v483_v4 = vrot.slane %v2621_v39, 2  ;;  %v480_v27 = vrot.slane %v2624_v40, 2 }
  0x61   : > { %4476 = vst [vmem:[#allocation33_spill] sm:$0xff] %v2910_v5  ;;  %v2923_v45 = vsel %vm454_vm1, %v476_v10, %v478_v42  ;;  %v2928_v31 = vsel %vm454_vm1, %v475_v52, %v476_v10  ;;  %v486_v42 = vrot.slane %v2640_v46, 2  ;;  %v485_v10 = vrot.slane %v2646_v48, 2 }
  0x62   : > { %541 = vrot.lane.b32.xlu1 %v2884_v2, %s2443_s30  ;;  %4478 = vst [vmem:[#allocation35_spill] sm:$0xff] %v2923_v45  ;;  %4479 = vst [vmem:[#allocation36_spill] sm:$0xff] %v2928_v31  ;;  %v2936_v6 = vsel %vm454_vm1, %v481_v7, %v483_v4  ;;  %v2941_v39 = vsel %vm454_vm1, %v480_v27, %v481_v7  ;;  %v491_v4 = vrot.slane %v2662_v54, 2  ;;  %v490_v7 = vrot.slane %v2668_v56, 2 }
  0x63   : > { %539 = vrot.lane.b32.xlu0 %v2889_v51, %s2443_s30  ;;  %4480 = vst [vmem:[#allocation37_spill] sm:$0xff] %v2936_v6  ;;  %4481 = vst [vmem:[#allocation38_spill] sm:$0xff] %v2941_v39  ;;  %v2949_v52 = vsel %vm454_vm1, %v486_v42, %v488_v36  ;;  %v2954_v47 = vsel %vm454_vm1, %v485_v10, %v486_v42  ;;  %v496_v36 = vrot.slane %v2684_v62, 2  ;;  %v495_v42 = vrot.slane %v2690_v3, 2 }
  0x64   : > { %4482 = vst [vmem:[#allocation39_spill] sm:$0xff] %v2949_v52  ;;  %4483 = vst [vmem:[#allocation40_spill] sm:$0xff] %v2954_v47  ;;  %v2962_v27 = vsel %vm454_vm1, %v491_v4, %v493_v21  ;;  %v2967_v55 = vsel %vm454_vm1, %v490_v7, %v491_v4  ;;  %v501_v21 = vrot.slane %v2706_v16, 2  ;;  %v500_v4 = vrot.slane %v2712_v19, 2 }
  0x65   : > { %4484 = vst [vmem:[#allocation41_spill] sm:$0xff] %v2962_v27  ;;  %4485 = vst [vmem:[#allocation42_spill] sm:$0xff] %v2967_v55  ;;  %v2975_v10 = vsel %vm454_vm1, %v496_v36, %v498_v49  ;;  %v2980_v63 = vsel %vm454_vm1, %v495_v42, %v496_v36  ;;  %v506_v49 = vrot.slane %v2728_v34, 2  ;;  %v505_v36 = vrot.slane %v2734_v37, 2 }
  0x66   : > { %545 = vrot.lane.b32.xlu1 %v2897_v43, %s2443_s30  ;;  %4486 = vst [vmem:[#allocation43_spill] sm:$0xff] %v2975_v10  ;;  %4487 = vst [vmem:[#allocation44_spill] sm:$0xff] %v2980_v63 }
  0x67   : > { %543 = vrot.lane.b32.xlu0 %v2902_v14, %s2443_s30 }
  0x6a   : > { %549 = vrot.lane.b32.xlu1 %v2910_v5, %s2443_s30 }
  0x6b   : > { %547 = vrot.lane.b32.xlu0 %v2915_v23, %s2443_s30 }
  0x6e   : > { %553 = vrot.lane.b32.xlu1 %v2923_v45, %s2443_s30 }
  0x6f   : > { %551 = vrot.lane.b32.xlu0 %v2928_v31, %s2443_s30 }
  0x72   : > { %557 = vrot.lane.b32.xlu1 %v2936_v6, %s2443_s30 }
  0x73   : > { %555 = vrot.lane.b32.xlu0 %v2941_v39, %s2443_s30 }
  0x76   : > { %561 = vrot.lane.b32.xlu1 %v2949_v52, %s2443_s30  ;;  %v503_v52 = vrot.slane %v2709_v18, 2  ;;  %v2993_v18 = vsel %vm454_vm1, %v500_v4, %v501_v21 }
  0x77   : > { %559 = vrot.lane.b32.xlu0 %v2954_v47, %s2443_s30  ;;  %v528_v47 = vrot.slane %v2819_v44, 2  ;;  %v531_v44 = vrot.slane %v2838_v61, 2 }
  0x78   : > { %v2988_v7 = vsel %vm454_vm1, %v501_v21, %v503_v52  ;;  %v511_v52 = vrot.slane %v2750_v53, 2  ;;  %v510_v21 = vrot.slane %v2756_v59, 2 }
  0x7a   : > { %565 = vrot.lane.b32.xlu1 %v2962_v27, %s2443_s30  ;;  %v508_v27 = vrot.slane %v2731_v35, 2  ;;  %v3006_v35 = vsel %vm454_vm1, %v505_v36, %v506_v49 }
  0x7b   : > { %563 = vrot.lane.b32.xlu0 %v2967_v55, %s2443_s30  ;;  %v523_v55 = vrot.slane %v2797_v57, 2 }
  0x7c   : > { %v3001_v42 = vsel %vm454_vm1, %v506_v49, %v508_v27  ;;  %v516_v27 = vrot.slane %v2772_v26, 2  ;;  %v515_v49 = vrot.slane %v2778_v20, 2 }
  0x7d   : > { %4488 = vst [vmem:[#allocation45_spill] sm:$0xff] %v3001_v42 }
  0x7e   : > { %569 = vrot.lane.b32.xlu1 %v2975_v10, %s2443_s30  ;;  %v513_v10 = vrot.slane %v2753_v58, 2  ;;  %v3019_v58 = vsel %vm454_vm1, %v510_v21, %v511_v52 }
  0x7f   : > { %567 = vrot.lane.b32.xlu0 %v2980_v63, %s2443_s30  ;;  %v518_v63 = vrot.slane %v2775_v29, 2  ;;  %4490 = vst [vmem:[#allocation47_spill] sm:$0xff] %v3019_v58  ;;  %v3032_v29 = vsel %vm454_vm1, %v515_v49, %v516_v27 }
  0x80   : > { %v3014_v4 = vsel %vm454_vm1, %v511_v52, %v513_v10  ;;  %v521_v10 = vrot.slane %v2794_v9, 2  ;;  %4492 = vst [vmem:[#allocation49_spill] sm:$0xff] %v3032_v29  ;;  %v520_v52 = vrot.slane %v2800_v60, 2 }
  0x81   : > { %4489 = vst [vmem:[#allocation46_spill] sm:$0xff] %v3014_v4  ;;  %v3027_v36 = vsel %vm454_vm1, %v516_v27, %v518_v63  ;;  %v526_v63 = vrot.slane %v2816_v41, 2  ;;  %v525_v27 = vrot.slane %v2822_v33, 2 }
  0x82   : > { %573 = vrot.lane.b32.xlu1 %v2988_v7, %s2443_s30  ;;  %4491 = vst [vmem:[#allocation48_spill] sm:$0xff] %v3027_v36  ;;  %v3040_v21 = vsel %vm454_vm1, %v521_v10, %v523_v55  ;;  %v3047_v57 = vsel %vm454_vm1, %v520_v52, %v521_v10  ;;  %v530_v52 = vrot.slane %v2844_v8, 2 }
  0x83   : > { %571 = vrot.lane.b32.xlu0 %v2993_v18, %s2443_s30  ;;  %4493 = vst [vmem:[#allocation50_spill] sm:$0xff] %v3040_v21  ;;  %4495 = vst [vmem:[#allocation52_spill] sm:$0xff] %v3047_v57  ;;  %v3057_v55 = vsel %vm454_vm1, %v526_v63, %v528_v47  ;;  %v3064_v10 = vsel %vm454_vm1, %v525_v27, %v526_v63 }
  0x84   : > { %4497 = vst [vmem:[#allocation54_spill] sm:$0xff] %v3057_v55  ;;  %4499 = vst [vmem:[#allocation56_spill] sm:$0xff] %v3064_v10 }
  0x86   : > { %577 = vrot.lane.b32.xlu1 %v3001_v42, %s2443_s30 }
  0x87   : > { %575 = vrot.lane.b32.xlu0 %v3006_v35, %s2443_s30 }
  0x8a   : > { %581 = vrot.lane.b32.xlu1 %v3014_v4, %s2443_s30 }
  0x8b   : > { %579 = vrot.lane.b32.xlu0 %v3019_v58, %s2443_s30 }
  0x8e   : > { %585 = vrot.lane.b32.xlu1 %v3027_v36, %s2443_s30 }
  0x8f   : > { %583 = vrot.lane.b32.xlu0 %v3032_v29, %s2443_s30 }
  0x90   : > { %v3044_v6 = vpop.permute.xlu1 %362 }
  0x91   : > { %4494 = vst [vmem:[#allocation51_spill] sm:$0xff] %v3044_v6  ;;  %v3050_v49 = vpop.permute.xlu0 %358  ;;  %v533_v6 = vrot.slane %v2841_v13, 2  ;;  %v3079_v13 = vsel %vm454_vm1, %v530_v52, %v531_v44 }
  0x92   : > { %4496 = vst [vmem:[#allocation53_spill] sm:$0xff] %v3050_v49  ;;  %589 = vrot.lane.b32.xlu1 %v3040_v21, %s2443_s30  ;;  %4502 = vst [vmem:[#allocation59_spill] sm:$0xff] %v3079_v13 }
  0x93   : > { %587 = vrot.lane.b32.xlu0 %v3047_v57, %s2443_s30  ;;  %v3074_v47 = vsel %vm454_vm1, %v531_v44, %v533_v6 }
  0x94   : > { %v3061_v39 = vpop.permute.xlu1 %364  ;;  %4501 = vst [vmem:[#allocation58_spill] sm:$0xff] %v3074_v47 }
  0x95   : > { %4498 = vst [vmem:[#allocation55_spill] sm:$0xff] %v3061_v39  ;;  %v3067_v49 = vpop.permute.xlu0 %360 }
  0x96   : > { %4500 = vst [vmem:[#allocation57_spill] sm:$0xff] %v3067_v49  ;;  %593 = vrot.lane.b32.xlu1 %v3057_v55, %s2443_s30 }
  0x97   : > { %591 = vrot.lane.b32.xlu0 %v3064_v10, %s2443_s30 }
  0x98   : > { %v3076_v21 = vpop.permute.xlu1 %368 }
  0x99   : > { %v3081_v63 = vpop.permute.xlu0 %366 }
  0x9a   : > { %597 = vrot.lane.b32.xlu1 %v3074_v47, %s2443_s30 }
  0x9b   : > { %595 = vrot.lane.b32.xlu0 %v3079_v13, %s2443_s30 }
  0x9c   : > { %v3087_v27 = vpop.permute.xlu1 %372 }
  0x9d   : > { %v3089_v55 = vpop.permute.xlu0 %370 }
  0x9e   : > { %635 = vrot.lane.b32.xlu1 %v2531_v1, %s2444_s4 }
  0x9f   : > { %633 = vrot.lane.b32.xlu0 %v2528_v0, %s2444_s4 }
  0xa0   : > { %v3095_v6 = vpop.permute.xlu1 %376 }
  0xa1   : > { %v3097_v44 = vpop.permute.xlu0 %374 }
  0xa2   : > { %639 = vrot.lane.b32.xlu1 %v2551_v11, %s2444_s4 }
  0xa3   : > { %637 = vrot.lane.b32.xlu0 %v2561_v15, %s2444_s4 }
  0xa4   : > { %v3103_v52 = vpop.permute.xlu1 %380 }
  0xa5   : > { %v3105_v47 = vpop.permute.xlu0 %378 }
  0xa6   : > { %643 = vrot.lane.b32.xlu1 %v2575_v22, %s2444_s4 }
  0xa7   : > { %641 = vrot.lane.b32.xlu0 %v2581_v24, %s2444_s4 }
  0xa8   : > { %v3111_v0 = vpop.permute.xlu1 %384 }
  0xa9   : > { %v3113_v1 = vpop.permute.xlu0 %382 }
  0xaa   : > { %647 = vrot.lane.b32.xlu1 %v2596_v30, %s2444_s4 }
  0xab   : > { %645 = vrot.lane.b32.xlu0 %v2602_v32, %s2444_s4 }
  0xac   : > { %v3119_v13 = vpop.permute.xlu1 %388 }
  0xad   : > { %v3121_v39 = vpop.permute.xlu0 %386 }
  0xae   : > { %651 = vrot.lane.b32.xlu1 %v2618_v38, %s2444_s4 }
  0xaf   : > { %649 = vrot.lane.b32.xlu0 %v2624_v40, %s2444_s4 }
  0xb0   : > { %v3127_v10 = vpop.permute.xlu1 %392 }
  0xb1   : > { %4503 = vst [vmem:[#allocation60_spill] sm:$0xff] %v3127_v10  ;;  %v3129_v57 = vpop.permute.xlu0 %390 }
  0xb2   : > { %4504 = vst [vmem:[#allocation61_spill] sm:$0xff] %v3129_v57  ;;  %655 = vrot.lane.b32.xlu1 %v2640_v46, %s2444_s4 }
  0xb3   : > { %653 = vrot.lane.b32.xlu0 %v2646_v48, %s2444_s4 }
  0xb4   : > { %v3135_v49 = vpop.permute.xlu1 %396 }
  0xb5   : > { %4505 = vst [vmem:[#allocation62_spill] sm:$0xff] %v3135_v49  ;;  %v3137_v45 = vpop.permute.xlu0 %394 }
  0xb6   : > { %4506 = vst [vmem:[#allocation63_spill] sm:$0xff] %v3137_v45  ;;  %659 = vrot.lane.b32.xlu1 %v2662_v54, %s2444_s4 }
  0xb7   : > { %657 = vrot.lane.b32.xlu0 %v2668_v56, %s2444_s4 }
  0xb8   : > { %v3143_v36 = vpop.permute.xlu1 %400 }
  0xb9   : > { %v3145_v10 = vpop.permute.xlu0 %398 }
  0xba   : > { %663 = vrot.lane.b32.xlu1 %v2684_v62, %s2444_s4 }
  0xbb   : > { %661 = vrot.lane.b32.xlu0 %v2690_v3, %s2444_s4 }
  0xbc   : > { %v3151_v57 = vpop.permute.xlu1 %404 }
  0xbd   : > { %v3153_v49 = vpop.permute.xlu0 %402 }
  0xbe   : > { %667 = vrot.lane.b32.xlu1 %v2706_v16, %s2444_s4 }
  0xbf   : > { %665 = vrot.lane.b32.xlu0 %v2712_v19, %s2444_s4 }
  0xc0   : > { %v3159_v45 = vpop.permute.xlu1 %408 }
  0xc1   : > { %v3161_v31 = vpop.permute.xlu0 %406 }
  0xc2   : > { %671 = vrot.lane.b32.xlu1 %v2728_v34, %s2444_s4 }
  0xc3   : > { %669 = vrot.lane.b32.xlu0 %v2734_v37, %s2444_s4 }
  0xc4   : > { %v3167_v62 = vpop.permute.xlu1 %412 }
  0xc5   : > { %v3169_v3 = vpop.permute.xlu0 %410 }
  0xc6   : > { %675 = vrot.lane.b32.xlu1 %v2750_v53, %s2444_s4 }
  0xc7   : > { %673 = vrot.lane.b32.xlu0 %v2756_v59, %s2444_s4 }
  0xc8   : > { %v3175_v16 = vpop.permute.xlu1 %416 }
  0xc9   : > { %v3177_v19 = vpop.permute.xlu0 %414 }
  0xca   : > { %679 = vrot.lane.b32.xlu1 %v2772_v26, %s2444_s4 }
  0xcb   : > { %677 = vrot.lane.b32.xlu0 %v2778_v20, %s2444_s4 }
  0xcc   : > { %v3183_v29 = vpop.permute.xlu1 %420 }
  0xcd   : > { %4507 = vst [vmem:[#allocation64_spill] sm:$0xff] %v3183_v29  ;;  %v3185_v5 = vpop.permute.xlu0 %418 }
  0xce   : > { %4508 = vst [vmem:[#allocation65_spill] sm:$0xff] %v3185_v5  ;;  %683 = vrot.lane.b32.xlu1 %v2794_v9, %s2444_s4  ;;  %v3214_v5 = vld [vmem:[%s2525_s28 + $0x180] sm:$0xff] }
  0xcf   : > { %681 = vrot.lane.b32.xlu0 %v2800_v60, %s2444_s4 }
  0xd0   : > { %v3191_v4 = vpop.permute.xlu1 %537 }
  0xd1   : > { %4509 = vst [vmem:[#allocation66_spill] sm:$0xff] %v3191_v4  ;;  %v3193_v23 = vpop.permute.xlu0 %535  ;;  %v3208_v4 = vld [vmem:[%s2525_s28 + $0x188] sm:$0xff] }
  0xd2   : > { %4510 = vst [vmem:[#allocation67_spill] sm:$0xff] %v3193_v23  ;;  %687 = vrot.lane.b32.xlu1 %v2816_v41, %s2444_s4  ;;  %v1239_v23 = vsel %vm1233_vm2, %v2551_v11, %v3076_v21  ;;  %v1241_v21 = vsel %vm1233_vm2, %v2575_v22, %v3087_v27 }
  0xd3   : > { %685 = vrot.lane.b32.xlu0 %v2822_v33, %s2444_s4 }
  0xd4   : > { %v3199_v58 = vpop.permute.xlu1 %541 }
  0xd5   : > { %4511 = vst [vmem:[#allocation68_spill] sm:$0xff] %v3199_v58  ;;  %v3201_v42 = vpop.permute.xlu0 %539  ;;  %v1238_v58 = vsel %vm1233_vm2, %v2561_v15, %v3081_v63  ;;  %v1243_v63 = vsel %vm1233_vm2, %v2596_v30, %v3095_v6  ;;  %v1244_v30 = vsel %vm1233_vm2, %v2624_v40, %v3105_v47  ;;  %v1246_v40 = vsel %vm1233_vm2, %v2646_v48, %v3113_v1 }
  0xd6   : > { %4512 = vst [vmem:[#allocation69_spill] sm:$0xff] %v3201_v42  ;;  %691 = vrot.lane.b32.xlu1 %v2838_v61, %s2444_s4  ;;  %v1248_v48 = vsel %vm1233_vm2, %v2668_v56, %v3121_v39 }
  0xd7   : > { %689 = vrot.lane.b32.xlu0 %v2844_v8, %s2444_s4 }
  0xd8   : > { %v546_v43 = vpop.permute.xlu1 %545 }
  0xd9   : > { %v3220_v42 = vsel %vm1266_vm3, %v1239_v23, %v546_v43  ;;  %v544_v61 = vpop.permute.xlu0 %543  ;;  %v1240_v43 = vsel %vm1233_vm2, %v2581_v24, %v3089_v55 }
  0xda   : > { %v3223_v8 = vsel %vm1266_vm3, %v1238_v58, %v544_v61  ;;  %695 = vrot.lane.b32.xlu1 %v3208_v4, %s2444_s4 }
  0xdb   : > { %693 = vrot.lane.b32.xlu0 %v3214_v5, %s2444_s4 }
  0xdc   : > { %v550_v29 = vpop.permute.xlu1 %549 }
  0xdd   : > { %v3236_v23 = vsel %vm1266_vm3, %v1241_v21, %v550_v29  ;;  %v548_v61 = vpop.permute.xlu0 %547  ;;  %v1242_v29 = vsel %vm1233_vm2, %v2602_v32, %v3097_v44 }
  0xde   : > { %v3239_v58 = vsel %vm1266_vm3, %v1240_v43, %v548_v61  ;;  %737 = vrot.lane.b32.xlu1 %v2568_v17, %s2445_s5 }
  0xdf   : > { %735 = vrot.lane.b32.xlu0 %v2554_v12, %s2445_s5  ;;  %v1245_v12 = vsel %vm1233_vm2, %v2618_v38, %v3103_v52  ;;  %v1247_v38 = vsel %vm1233_vm2, %v2640_v46, %v3111_v0  ;;  %v1249_v46 = vsel %vm1233_vm2, %v2662_v54, %v3119_v13 }
  0xe0   : > { %v554_v27 = vpop.permute.xlu1 %553 }
  0xe1   : > { %v3252_v55 = vsel %vm1266_vm3, %v1243_v63, %v554_v27  ;;  %v552_v21 = vpop.permute.xlu0 %551  ;;  %v4513_v63 = vld [vmem:[#allocation6_spill] sm:$0xff] }
  0xe2   : > { %v3255_v43 = vsel %vm1266_vm3, %v1242_v29, %v552_v21  ;;  %741 = vrot.lane.b32.xlu1 %v2587_v25, %s2445_s5  ;;  %v4514_v21 = vld [vmem:[#allocation17_spill] sm:$0xff] }
  0xe3   : > { %739 = vrot.lane.b32.xlu0 %v2592_v28, %s2445_s5 }
  0xe4   : > { %v558_v17 = vpop.permute.xlu1 %557 }
  0xe5   : > { %v3268_v6 = vsel %vm1266_vm3, %v1245_v12, %v558_v17  ;;  %v556_v44 = vpop.permute.xlu0 %555 }
  0xe6   : > { %v3271_v61 = vsel %vm1266_vm3, %v1244_v30, %v556_v44  ;;  %767 = vrot.lane.b32.xlu1 %v2746_v50, %s2445_s5  ;;  %v1254_v30 = vsel %vm1233_vm2, %v2734_v37, %v3145_v10 }
  0xe7   : > { %743 = vrot.lane.b32.xlu0 %v4513_v63, %s2445_s5 }
  0xe8   : > { %v562_v52 = vpop.permute.xlu1 %561 }
  0xe9   : > { %v3284_v47 = vsel %vm1266_vm3, %v1247_v38, %v562_v52  ;;  %v560_v27 = vpop.permute.xlu0 %559  ;;  %v226_v38 = vld [vmem:[%s4343_s1 + $0x18] sm:$0xff] }
  0xea   : > { %v3287_v29 = vsel %vm1266_vm3, %v1246_v40, %v560_v27  ;;  %836 = vrot.lane.b32.xlu1 %v2889_v51, %s2446_s6 }
  0xeb   : > { %769 = vrot.lane.b32.xlu0 %v4514_v21, %s2445_s5 }
  0xec   : > { %v566_v0 = vpop.permute.xlu1 %565 }
  0xed   : > { %v3300_v1 = vsel %vm1266_vm3, %v1249_v46, %v566_v0  ;;  %v564_v12 = vpop.permute.xlu0 %563  ;;  %v4515_v46 = vld [vmem:[#allocation19_spill] sm:$0xff]  ;;  %v1259_v0 = vsel %vm1233_vm2, %v2772_v26, %v3159_v45  ;;  %v1261_v45 = vsel %vm1233_vm2, %v2794_v9, %v3167_v62 }
  0xee   : > { %v3303_v17 = vsel %vm1266_vm3, %v1248_v48, %v564_v12  ;;  %838 = vrot.lane.b32.xlu1 %v2884_v2, %s2446_s6  ;;  %v227_v2 = vld [vmem:[%s4343_s1 + $0x20] sm:$0xf]  ;;  %v1258_v12 = vsel %vm1233_vm2, %v2778_v20, %v3161_v31 }
  0xef   : > { %868 = vrot.lane.b32.xlu0 %v2993_v18, %s2446_s6  ;;  %2180 = vmatprep.subr.msk.mxu0 %vm1600_vm4, %v227_v2 }
  0xf0   : > { %v3309_v51 = vpop.permute.xlu1 %569  ;;  %2238 = vmatprep.subr.msk.mxu1 %vm1600_vm4, %v227_v2  ;;  %2181 = vmatpush3.msk.msra.mxu0 %vm1600_vm4, %v227_v2 }
  0xf1   : > { %v3311_v54 = vpop.permute.xlu0 %567  ;;  %2243 = vmatpush3.msk.msra.mxu1 %vm1600_vm4, %v227_v2  ;;  %2182 = vmatprep.subr.mxu0 %v226_v38 }
  0xf2   : > { %934 = vrot.lane.b32.xlu1 %v2561_v15, %s2447_s7  ;;  %v1255_v15 = vsel %vm1233_vm2, %v2728_v34, %v3143_v36  ;;  %2183 = vmatpush3.msra.mxu0 %v226_v38  ;;  %v1257_v36 = vsel %vm1233_vm2, %v2750_v53, %v3151_v57  ;;  %v224_v57 = vld [vmem:[%s4343_s1 + $0x8] sm:$0xff] }
  0xf3   : > { %870 = vrot.lane.b32.xlu0 %v2988_v7, %s2446_s6  ;;  %2239 = vmatprep.subr.mxu1 %v226_v38 }
  0xf4   : > { %v3317_v56 = vpop.permute.xlu1 %573  ;;  %2244 = vmatpush3.msra.mxu1 %v226_v38 }
  0xf5   : > { %v3319_v39 = vpop.permute.xlu0 %571 }
  0xf6   : > { %936 = vrot.lane.b32.xlu1 %v2551_v11, %s2447_s7 }
  0xf7   : > { %966 = vrot.lane.b32.xlu0 %v2734_v37, %s2447_s7  ;;  %v225_v37 = vld [vmem:[%s4343_s1 + $0x10] sm:$0xff] }
  0xf8   : > { %v578_v13 = vpop.permute.xlu1 %577  ;;  %2184 = vmatprep.subr.mxu0 %v225_v37  ;;  %2240 = vmatprep.subr.mxu1 %v225_v37 }
  0xf9   : > { %v3335_v11 = vsel %vm1266_vm3, %v1255_v15, %v578_v13  ;;  %v576_v44 = vpop.permute.xlu0 %575  ;;  %2185 = vmatpush3.msra.mxu0 %v225_v37  ;;  %2245 = vmatpush3.msra.mxu1 %v225_v37 }
  0xfa   : > { %v3341_v52 = vsel %vm1266_vm3, %v1254_v30, %v576_v44  ;;  %1036 = vrot.lane.b32.xlu1 %v2592_v28, %s2448_s17  ;;  %v1256_v28 = vsel %vm1233_vm2, %v2756_v59, %v3153_v49  ;;  %2186 = vmatprep.subr.mxu0 %v224_v57  ;;  %v223_v49 = vld [vmem:[%s4343_s1] sm:$0xff]  ;;  %v4516_v30 = vld [vmem:[#allocation18_spill] sm:$0xff]  ;;  %v1260_v44 = vsel %vm1233_vm2, %v2800_v60, %v3169_v3 }
  0xfb   : > { %968 = vrot.lane.b32.xlu0 %v2728_v34, %s2447_s7  ;;  %2187 = vmatpush3.msra.mxu0 %v224_v57  ;;  %v1262_v3 = vsel %vm1233_vm2, %v2822_v33, %v3177_v19  ;;  %v4520_v33 = vld [vmem:[#allocation27_spill] sm:$0xff] }
  0xfc   : > { %v582_v10 = vpop.permute.xlu1 %581  ;;  %2188 = vmatprep.subr.mxu0 %v223_v49  ;;  %2241 = vmatprep.subr.mxu1 %v224_v57 }
  0xfd   : > { %v3357_v40 = vsel %vm1266_vm3, %v1257_v36, %v582_v10  ;;  %v580_v34 = vpop.permute.xlu0 %579  ;;  %2189 = vmatpush3.msra.mxu0 %v223_v49  ;;  %2246 = vmatpush3.msra.mxu1 %v224_v57 }
  0xfe   : > { %v3360_v27 = vsel %vm1266_vm3, %v1256_v28, %v580_v34  ;;  %771 = vrot.lane.b32.xlu1 %v4515_v46, %s2445_s5  ;;  %2242 = vmatprep.subr.mxu1 %v223_v49 }
  0xff   : > { %1068 = vrot.lane.b32.xlu0 %v4515_v46, %s2448_s17  ;;  %2247 = vmatpush3.msra.mxu1 %v223_v49  ;;  %v4517_v46 = vld [vmem:[#allocation64_spill] sm:$0xff]  ;;  %v4519_v49 = vld [vmem:[#allocation65_spill] sm:$0xff] }
 0x100   : > { %v586_v48 = vpop.permute.xlu1 %585  ;;  %v1264_v19 = vsel %vm1233_vm2, %v4520_v33, %v4519_v49  ;;  %v4528_v33 = vld [vmem:[#allocation47_spill] sm:$0xff] }
 0x101   : > { %v3379_v2 = vsel %vm1266_vm3, %v1259_v0, %v586_v48  ;;  %v584_v15 = vpop.permute.xlu0 %583 }
 0x102   : > { %v3382_v13 = vsel %vm1266_vm3, %v1258_v12, %v584_v15  ;;  %1070 = vrot.lane.b32.xlu1 %v4516_v30, %s2448_s17 }
 0x103   : > { %1038 = vrot.lane.b32.xlu0 %v2587_v25, %s2448_s17  ;;  %v1263_v25 = vsel %vm1233_vm2, %v2816_v41, %v3175_v16  ;;  %v4518_v41 = vld [vmem:[#allocation26_spill] sm:$0xff] }
 0x104   : > { %v590_v31 = vpop.permute.xlu1 %589  ;;  %v1265_v16 = vsel %vm1233_vm2, %v4518_v41, %v4517_v46  ;;  %v4523_v46 = vld [vmem:[#allocation21_spill] sm:$0xff]  ;;  %v4524_v41 = vld [vmem:[#allocation20_spill] sm:$0xff] }
 0x105   : > { %v3395_v38 = vsel %vm1266_vm3, %v1261_v45, %v590_v31  ;;  %v588_v37 = vpop.permute.xlu0 %587  ;;  %v4522_v45 = vld [vmem:[#allocation45_spill] sm:$0xff] }
 0x106   : > { %v3398_v36 = vsel %vm1266_vm3, %v1260_v44, %v588_v37  ;;  %1169 = vrot.lane.b32.xlu1 %v3006_v35, %s2449_s29 }
 0x107   : > { %1137 = vrot.lane.b32.xlu0 %v2902_v14, %s2449_s29 }
 0x108   : > { %v594_v62 = vpop.permute.xlu1 %593 }
 0x109   : > { %v3411_v10 = vsel %vm1266_vm3, %v1263_v25, %v594_v62  ;;  %v592_v28 = vpop.permute.xlu0 %591 }
 0x10a   : > { %v3414_v34 = vsel %vm1266_vm3, %v1262_v3, %v592_v28  ;;  %840 = vrot.lane.b32.xlu1 %v2902_v14, %s2446_s6  ;;  %v4521_v14 = vld [vmem:[#allocation32_spill] sm:$0xff] }
 0x10b   : > { %773 = vrot.lane.b32.xlu0 %v4516_v30, %s2445_s5 }
 0x10c   : > { %v598_v57 = vpop.permute.xlu1 %597 }
 0x10d   : > { %v3427_v0 = vsel %vm1266_vm3, %v1265_v16, %v598_v57  ;;  %v596_v48 = vpop.permute.xlu0 %595 }
 0x10e   : > { %v3430_v12 = vsel %vm1266_vm3, %v1264_v19, %v596_v48  ;;  %1139 = vrot.lane.b32.xlu1 %v4521_v14, %s2449_s29 }
 0x10f   : > { %872 = vrot.lane.b32.xlu0 %v3006_v35, %s2446_s6 }
 0x110   : > { %v3436_v15 = vpop.permute.xlu1 %635 }
 0x111   : > { %v3438_v30 = vpop.permute.xlu0 %633 }
 0x112   : > { %842 = vrot.lane.b32.xlu1 %v4521_v14, %s2446_s6 }
 0x113   : > { %1171 = vrot.lane.b32.xlu0 %v4522_v45, %s2449_s29 }
 0x114   : > { %v3444_v31 = vpop.permute.xlu1 %639 }
 0x115   : > { %v3446_v44 = vpop.permute.xlu0 %637 }
 0x116   : > { %938 = vrot.lane.b32.xlu1 %v2581_v24, %s2447_s7 }
 0x117   : > { %874 = vrot.lane.b32.xlu0 %v4522_v45, %s2446_s6 }
 0x118   : > { %v644_v35 = vpop.permute.xlu1 %643 }
 0x119   : > { %v3454_v37 = vsel %vm1299_vm5, %v3220_v42, %v644_v35  ;;  %v642_v25 = vpop.permute.xlu0 %641  ;;  %v4532_v35 = vld [vmem:[#allocation46_spill] sm:$0xff] }
 0x11a   : > { %v3458_v62 = vsel %vm1299_vm5, %v3223_v8, %v642_v25  ;;  %940 = vrot.lane.b32.xlu1 %v2575_v22, %s2447_s7  ;;  %v4533_v25 = vld [vmem:[#allocation33_spill] sm:$0xff] }
 0x11b   : > { %970 = vrot.lane.b32.xlu0 %v2756_v59, %s2447_s7 }
 0x11c   : > { %v648_v24 = vpop.permute.xlu1 %647 }
 0x11d   : > { %v3466_v3 = vsel %vm1299_vm5, %v3236_v23, %v648_v24  ;;  %v646_v28 = vpop.permute.xlu0 %645 }
 0x11e   : > { %v3470_v42 = vsel %vm1299_vm5, %v3239_v58, %v646_v28  ;;  %1040 = vrot.lane.b32.xlu1 %v4513_v63, %s2448_s17 }
 0x11f   : > { %972 = vrot.lane.b32.xlu0 %v2750_v53, %s2447_s7 }
 0x120   : > { %v652_v22 = vpop.permute.xlu1 %651 }
 0x121   : > { %v3478_v59 = vsel %vm1299_vm5, %v3252_v55, %v652_v22  ;;  %v650_v8 = vpop.permute.xlu0 %649 }
 0x122   : > { %v3482_v23 = vsel %vm1299_vm5, %v3255_v43, %v650_v8  ;;  %775 = vrot.lane.b32.xlu1 %v4523_v46, %s2445_s5  ;;  %v4525_v43 = vld [vmem:[#allocation5_spill] sm:$0xff] }
 0x123   : > { %1072 = vrot.lane.b32.xlu0 %v4523_v46, %s2448_s17 }
 0x124   : > { %v656_v58 = vpop.permute.xlu1 %655 }
 0x125   : > { %v3490_v53 = vsel %vm1299_vm5, %v3268_v6, %v656_v58  ;;  %v654_v63 = vpop.permute.xlu0 %653 }
 0x126   : > { %v3494_v55 = vsel %vm1299_vm5, %v3271_v61, %v654_v63  ;;  %1074 = vrot.lane.b32.xlu1 %v4524_v41, %s2448_s17  ;;  %v4529_v61 = vld [vmem:[#allocation34_spill] sm:$0xff] }
 0x127   : > { %1042 = vrot.lane.b32.xlu0 %v4525_v43, %s2448_s17 }
 0x128   : > { %v660_v16 = vpop.permute.xlu1 %659 }
 0x129   : > { %v3502_v57 = vsel %vm1299_vm5, %v3284_v47, %v660_v16  ;;  %v658_v49 = vpop.permute.xlu0 %657 }
 0x12a   : > { %4526 = vst [vmem:[#allocation6_spill] sm:$0xff] %v3502_v57  ;;  %v3506_v6 = vsel %vm1299_vm5, %v3287_v29, %v658_v49  ;;  %1173 = vrot.lane.b32.xlu1 %v4528_v33, %s2449_s29  ;;  %v4534_v49 = vld [vmem:[#allocation23_spill] sm:$0xff] }
 0x12b   : > { %4527 = vst [vmem:[#allocation17_spill] sm:$0xff] %v3506_v6  ;;  %1141 = vrot.lane.b32.xlu0 %v4529_v61, %s2449_s29 }
 0x12c   : > { %v664_v19 = vpop.permute.xlu1 %663 }
 0x12d   : > { %v3514_v48 = vsel %vm1299_vm5, %v3300_v1, %v664_v19  ;;  %v662_v14 = vpop.permute.xlu0 %661 }
 0x12e   : > { %4530 = vst [vmem:[#allocation19_spill] sm:$0xff] %v3514_v48  ;;  %v3518_v47 = vsel %vm1299_vm5, %v3303_v17, %v662_v14  ;;  %777 = vrot.lane.b32.xlu1 %v4524_v41, %s2445_s5  ;;  %v3663_v48 = vld [vmem:[%s2525_s28 + $0xc0] sm:$0xff] }
 0x12f   : > { %4531 = vst [vmem:[#allocation18_spill] sm:$0xff] %v3518_v47  ;;  %745 = vrot.lane.b32.xlu0 %v4525_v43, %s2445_s5  ;;  %v4549_v47 = vld [vmem:[#allocation53_spill] sm:$0xff] }
 0x130   : > { %v3524_v29 = vpop.permute.xlu1 %667 }
 0x131   : > { %v3526_v45 = vpop.permute.xlu0 %665 }
 0x132   : > { %876 = vrot.lane.b32.xlu1 %v4528_v33, %s2446_s6 }
 0x133   : > { %844 = vrot.lane.b32.xlu0 %v4529_v61, %s2446_s6 }
 0x134   : > { %v3532_v1 = vpop.permute.xlu1 %671 }
 0x135   : > { %v3534_v17 = vpop.permute.xlu0 %669 }
 0x136   : > { %1175 = vrot.lane.b32.xlu1 %v4532_v35, %s2449_s29 }
 0x137   : > { %1143 = vrot.lane.b32.xlu0 %v4533_v25, %s2449_s29 }
 0x138   : > { %v676_v24 = vpop.permute.xlu1 %675 }
 0x139   : > { %v3542_v28 = vsel %vm1299_vm5, %v3335_v11, %v676_v24  ;;  %v674_v22 = vpop.permute.xlu0 %673 }
 0x13a   : > { %v3546_v8 = vsel %vm1299_vm5, %v3341_v52, %v674_v22  ;;  %878 = vrot.lane.b32.xlu1 %v4532_v35, %s2446_s6  ;;  %v4540_v35 = vld [vmem:[#allocation22_spill] sm:$0xff]  ;;  %v4542_v22 = vld [vmem:[#allocation49_spill] sm:$0xff] }
 0x13b   : > { %846 = vrot.lane.b32.xlu0 %v4533_v25, %s2446_s6 }
 0x13c   : > { %v680_v46 = vpop.permute.xlu1 %679 }
 0x13d   : > { %v3554_v58 = vsel %vm1299_vm5, %v3357_v40, %v680_v46  ;;  %v678_v63 = vpop.permute.xlu0 %677 }
 0x13e   : > { %v3558_v11 = vsel %vm1299_vm5, %v3360_v27, %v678_v63  ;;  %974 = vrot.lane.b32.xlu1 %v2778_v20, %s2447_s7  ;;  %v2361_v27 = vld [vmem:[%s2525_s28 + $0x68] sm:$0xff] }
 0x13f   : > { %942 = vrot.lane.b32.xlu0 %v2602_v32, %s2447_s7 }
 0x140   : > { %v684_v52 = vpop.permute.xlu1 %683 }
 0x141   : > { %v3566_v41 = vsel %vm1299_vm5, %v3379_v2, %v684_v52  ;;  %v682_v43 = vpop.permute.xlu0 %681 }
 0x142   : > { %v3570_v40 = vsel %vm1299_vm5, %v3382_v13, %v682_v43  ;;  %976 = vrot.lane.b32.xlu1 %v2772_v26, %s2447_s7  ;;  %v4535_v13 = vld [vmem:[#allocation8_spill] sm:$0xff] }
 0x143   : > { %944 = vrot.lane.b32.xlu0 %v2361_v27, %s2447_s7 }
 0x144   : > { %v688_v20 = vpop.permute.xlu1 %687 }
 0x145   : > { %v3578_v32 = vsel %vm1299_vm5, %v3395_v38, %v688_v20  ;;  %v686_v16 = vpop.permute.xlu0 %685  ;;  %v4544_v20 = vld [vmem:[#allocation48_spill] sm:$0xff] }
 0x146   : > { %v3582_v2 = vsel %vm1299_vm5, %v3398_v36, %v686_v16  ;;  %1076 = vrot.lane.b32.xlu1 %v4534_v49, %s2448_s17  ;;  %v4545_v16 = vld [vmem:[#allocation35_spill] sm:$0xff] }
 0x147   : > { %1044 = vrot.lane.b32.xlu0 %v4535_v13, %s2448_s17 }
 0x148   : > { %v692_v26 = vpop.permute.xlu1 %691 }
 0x149   : > { %v3590_v33 = vsel %vm1299_vm5, %v3411_v10, %v692_v26  ;;  %v690_v61 = vpop.permute.xlu0 %689 }
 0x14a   : > { %4536 = vst [vmem:[#allocation64_spill] sm:$0xff] %v3590_v33  ;;  %v3594_v38 = vsel %vm1299_vm5, %v3414_v34, %v690_v61  ;;  %779 = vrot.lane.b32.xlu1 %v4534_v49, %s2445_s5  ;;  %v4541_v34 = vld [vmem:[#allocation7_spill] sm:$0xff] }
 0x14b   : > { %4537 = vst [vmem:[#allocation26_spill] sm:$0xff] %v3594_v38  ;;  %747 = vrot.lane.b32.xlu0 %v4535_v13, %s2445_s5  ;;  %v4550_v33 = vld [vmem:[#allocation67_spill] sm:$0xff] }
 0x14c   : > { %v696_v36 = vpop.permute.xlu1 %695 }
 0x14d   : > { %v3602_v19 = vsel %vm1299_vm5, %v3427_v0, %v696_v36  ;;  %v694_v14 = vpop.permute.xlu0 %693  ;;  %v4543_v0 = vld [vmem:[#allocation36_spill] sm:$0xff] }
 0x14e   : > { %4538 = vst [vmem:[#allocation65_spill] sm:$0xff] %v3602_v19  ;;  %v3606_v10 = vsel %vm1299_vm5, %v3430_v12, %v694_v14  ;;  %1078 = vrot.lane.b32.xlu1 %v4540_v35, %s2448_s17  ;;  %v2362_v36 = vld [vmem:[%s2525_s28 + $0x78] sm:$0xff]  ;;  %v4548_v19 = vld [vmem:[#allocation61_spill] sm:$0xff] }
 0x14f   : > { %4539 = vst [vmem:[#allocation27_spill] sm:$0xff] %v3606_v10  ;;  %1046 = vrot.lane.b32.xlu0 %v4541_v34, %s2448_s17 }
 0x150   : > { %v3612_v25 = vpop.permute.xlu1 %737 }
 0x151   : > { %v736_v24 = vpop.permute.xlu0 %735 }
 0x152   : > { %1177 = vrot.lane.b32.xlu1 %v4542_v22, %s2449_s29 }
 0x153   : > { %1145 = vrot.lane.b32.xlu0 %v4543_v0, %s2449_s29 }
 0x154   : > { %v3618_v46 = vpop.permute.xlu1 %741 }
 0x155   : > { %v3620_v63 = vpop.permute.xlu0 %739 }
 0x156   : > { %781 = vrot.lane.b32.xlu1 %v4540_v35, %s2445_s5 }
 0x157   : > { %749 = vrot.lane.b32.xlu0 %v4541_v34, %s2445_s5  ;;  %v2363_v34 = vld [vmem:[%s2525_s28 + $0x80] sm:$0xff] }
 0x158   : > { %v768_v12 = vpop.permute.xlu1 %767 }
 0x159   : > { %v3626_v52 = vpop.permute.xlu0 %743 }
 0x15a   : > { %880 = vrot.lane.b32.xlu1 %v4542_v22, %s2446_s6 }
 0x15b   : > { %848 = vrot.lane.b32.xlu0 %v4543_v0, %s2446_s6 }
 0x15c   : > { %v837_v43 = vpop.permute.xlu1 %836 }
 0x15d   : > { %v3632_v27 = vpop.permute.xlu0 %769 }
 0x15e   : > { %1179 = vrot.lane.b32.xlu1 %v4544_v20, %s2449_s29 }
 0x15f   : > { %1147 = vrot.lane.b32.xlu0 %v4545_v16, %s2449_s29 }
 0x160   : > { %v3638_v49 = vpop.permute.xlu1 %838 }
 0x161   : > { %v869_v13 = vpop.permute.xlu0 %868 }
 0x162   : > { %882 = vrot.lane.b32.xlu1 %v4544_v20, %s2446_s6  ;;  %v4546_v20 = vld [vmem:[#allocation25_spill] sm:$0xff] }
 0x163   : > { %850 = vrot.lane.b32.xlu0 %v4545_v16, %s2446_s6 }
 0x164   : > { %v935_v26 = vpop.permute.xlu1 %934 }
 0x165   : > { %v3644_v61 = vpop.permute.xlu0 %870 }
 0x166   : > { %978 = vrot.lane.b32.xlu1 %v2800_v60, %s2447_s7  ;;  %v4547_v60 = vld [vmem:[#allocation10_spill] sm:$0xff] }
 0x167   : > { %946 = vrot.lane.b32.xlu0 %v2362_v36, %s2447_s7 }
 0x168   : > { %v937_v14 = vpop.permute.xlu1 %936 }
 0x169   : > { %v967_v35 = vpop.permute.xlu0 %966 }
 0x16a   : > { %980 = vrot.lane.b32.xlu1 %v2794_v9, %s2447_s7  ;;  %v1250_v9 = vsel %vm1233_vm2, %v3663_v48, %v4548_v19 }
 0x16b   : > { %948 = vrot.lane.b32.xlu0 %v2363_v34, %s2447_s7  ;;  %v2365_v34 = vld [vmem:[%s2525_s28] sm:$0xff]  ;;  %v1283_v57 = vsel %vm1266_vm3, %v1250_v9, %v3311_v54 }
 0x16c   : > { %v1037_v22 = vpop.permute.xlu1 %1036  ;;  %v1234_v10 = vsel %vm1233_vm2, %v2365_v34, %v4549_v47  ;;  %v1316_v19 = vsel %vm1299_vm5, %v1283_v57, %v3526_v45 }
 0x16d   : > { %v3654_v0 = vpop.permute.xlu0 %968  ;;  %v1267_v6 = vsel %vm1266_vm3, %v1234_v10, %v4550_v33  ;;  %v1349_v47 = vsel %vm1332_vm6, %v1316_v19, %v768_v12  ;;  %v4551_v33 = vld [vmem:[#allocation24_spill] sm:$0xff]  ;;  %v2366_v19 = vld [vmem:[%s2525_s28 + $0x8] sm:$0xff] }
 0x16e   : > { %1080 = vrot.lane.b32.xlu1 %v4546_v20, %s2448_s17 }
 0x16f   : > { %1048 = vrot.lane.b32.xlu0 %v4547_v60, %s2448_s17 }
 0x170   : > { %v3660_v16 = vpop.permute.xlu1 %771 }
 0x171   : > { %v1069_v36 = vpop.permute.xlu0 %1068 }
 0x172   : > { %783 = vrot.lane.b32.xlu1 %v4546_v20, %s2445_s5  ;;  %v1300_v20 = vsel %vm1299_vm5, %v1267_v6, %v3438_v30  ;;  %v4552_v30 = vld [vmem:[#allocation9_spill] sm:$0xff] }
 0x173   : > { %751 = vrot.lane.b32.xlu0 %v4547_v60, %s2445_s5  ;;  %v1333_v54 = vsel %vm1332_vm6, %v1300_v20, %v736_v24  ;;  %v1382_v60 = vsel %vm1365_vm7, %v1349_v47, %v869_v13  ;;  %v4553_v20 = vld [vmem:[#allocation57_spill] sm:$0xff] }
 0x174   : > { %v1071_v38 = vpop.permute.xlu1 %1070  ;;  %v1366_v57 = vsel %vm1365_vm7, %v1333_v54, %v837_v43  ;;  %v1415_v45 = vsel %vm1398_vm8, %v1382_v60, %v967_v35  ;;  %v1235_v43 = vsel %vm1233_vm2, %v2366_v19, %v4553_v20  ;;  %v4554_v35 = vld [vmem:[#allocation52_spill] sm:$0xff] }
 0x175   : > { %v1039_v34 = vpop.permute.xlu0 %1038  ;;  %v1399_v6 = vsel %vm1398_vm8, %v1366_v57, %v935_v26  ;;  %v1448_v10 = vsel %vm1431_vm9, %v1415_v45, %v1069_v36  ;;  %v4555_v26 = vld [vmem:[#allocation66_spill] sm:$0xff] }
 0x176   : > { %1082 = vrot.lane.b32.xlu1 %v4551_v33, %s2448_s17  ;;  %v1432_v12 = vsel %vm1431_vm9, %v1399_v6, %v1037_v22  ;;  %v1268_v36 = vsel %vm1266_vm3, %v1235_v43, %v4555_v26  ;;  %v4556_v22 = vld [vmem:[#allocation38_spill] sm:$0xff]  ;;  %v2368_v26 = vld [vmem:[%s2525_s28 + $0x150] sm:$0xff] }
 0x177   : > { %1050 = vrot.lane.b32.xlu0 %v4552_v30, %s2448_s17  ;;  %v1301_v54 = vsel %vm1299_vm5, %v1268_v36, %v3436_v15  ;;  %v4558_v43 = vld [vmem:[#allocation50_spill] sm:$0xff]  ;;  %v2369_v36 = vld [vmem:[%s2525_s28 + $0x90] sm:$0xff] }
 0x178   : > { %v1170_v24 = vpop.permute.xlu1 %1169  ;;  %v1334_v57 = vsel %vm1332_vm6, %v1301_v54, %v3612_v25 }
 0x179   : > { %v1138_v13 = vpop.permute.xlu0 %1137  ;;  %v1481_v9 = vsel %vm1464_vm10, %v1448_v10, %v1170_v24  ;;  %v1367_v6 = vsel %vm1365_vm7, %v1334_v57, %v3638_v49  ;;  %v3721_v10 = vld [vmem:[%s2525_s28 + $0xc8] sm:$0xff]  ;;  %v4557_v24 = vld [vmem:[#allocation60_spill] sm:$0xff] }
 0x17a   : > { %1181 = vrot.lane.b32.xlu1 %v4554_v35, %s2449_s29  ;;  %v1465_v47 = vsel %vm1464_vm10, %v1432_v12, %v1138_v13  ;;  %2214 = vmatprep.mubr.msk.f32.mxu1 %vm1503_vm11, %v1481_v9  ;;  %v1251_v12 = vsel %vm1233_vm2, %v3721_v10, %v4557_v24  ;;  %v1400_v15 = vsel %vm1398_vm8, %v1367_v6, %v937_v14  ;;  %v2370_v57 = vld [vmem:[%s2525_s28 + $0x158] sm:$0xff] }
 0x17b   : > { %1149 = vrot.lane.b32.xlu0 %v4556_v22, %s2449_s29  ;;  %2190 = vmatprep.mubr.msk.f32.mxu0 %vm1503_vm11, %v1465_v47  ;;  %v1284_v25 = vsel %vm1266_vm3, %v1251_v12, %v3309_v51  ;;  %v1433_v13 = vsel %vm1431_vm9, %v1400_v15, %v1039_v34  ;;  %v2371_v6 = vld [vmem:[%s2525_s28 + $0x98] sm:$0xff] }
 0x17c   : > { %v3710_v60 = vpop.permute.xlu1 %840  ;;  %v3774_v15 = vld [vmem:[%s2525_s28 + $0xd8] sm:$0xff] }
 0x17d   : > { %v3714_v45 = vpop.permute.xlu0 %773 }
 0x17e   : > { %785 = vrot.lane.b32.xlu1 %v4551_v33, %s2445_s5  ;;  %v1317_v33 = vsel %vm1299_vm5, %v1284_v25, %v3524_v29  ;;  %v4560_v25 = vld [vmem:[#allocation63_spill] sm:$0xff] }
 0x17f   : > { %753 = vrot.lane.b32.xlu0 %v4552_v30, %s2445_s5  ;;  %v1350_v20 = vsel %vm1332_vm6, %v1317_v33, %v3632_v27  ;;  %v2373_v33 = vld [vmem:[%s2525_s28 + $0x18] sm:$0xff] }
 0x180   : > { %v1140_v49 = vpop.permute.xlu1 %1139  ;;  %v1383_v51 = vsel %vm1365_vm7, %v1350_v20, %v3644_v61  ;;  %v4559_v61 = vld [vmem:[#allocation37_spill] sm:$0xff] }
 0x181   : > { %v1466_v9 = vsel %vm1464_vm10, %v1433_v13, %v1140_v49  ;;  %v873_v19 = vpop.permute.xlu0 %872  ;;  %v1416_v29 = vsel %vm1398_vm8, %v1383_v51, %v3654_v0  ;;  %v1252_v13 = vsel %vm1233_vm2, %v3774_v15, %v4560_v25  ;;  %v4561_v49 = vld [vmem:[#allocation29_spill] sm:$0xff] }
 0x182   : > { %884 = vrot.lane.b32.xlu1 %v4554_v35, %s2446_s6  ;;  %2191 = vmatmul.mubr.msk.f32.vlgmr.msra.gmra.mxu0 %vm1503_vm11, %v1466_v9  ;;  %v1449_v27 = vsel %vm1431_vm9, %v1416_v29, %v1071_v38  ;;  %v4562_v9 = vld [vmem:[#allocation51_spill] sm:$0xff]  ;;  %v1285_v51 = vsel %vm1266_vm3, %v1252_v13, %v3319_v39  ;;  %v4563_v29 = vld [vmem:[#allocation12_spill] sm:$0xff] }
 0x183   : > { %852 = vrot.lane.b32.xlu0 %v4556_v22, %s2446_s6  ;;  %v1236_v20 = vsel %vm1233_vm2, %v2373_v33, %v4562_v9  ;;  %v4567_v33 = vld [vmem:[#allocation62_spill] sm:$0xff] }
 0x184   : > { %v3746_v14 = vpop.permute.xlu1 %842 }
 0x185   : > { %v1172_v34 = vpop.permute.xlu0 %1171 }
 0x186   : > { %v1482_v30 = vsel %vm1464_vm10, %v1449_v27, %v1172_v34  ;;  %1183 = vrot.lane.b32.xlu1 %v4558_v43, %s2449_s29  ;;  %v4564_v27 = vld [vmem:[#allocation69_spill] sm:$0xff] }
 0x187   : > { %1151 = vrot.lane.b32.xlu0 %v4559_v61, %s2449_s29  ;;  %2215 = vmatmul.mubr.msk.f32.vlgmr.msra.gmra.mxu1 %vm1503_vm11, %v1482_v30  ;;  %v1269_v34 = vsel %vm1266_vm3, %v1236_v20, %v4564_v27  ;;  %v1318_v30 = vsel %vm1299_vm5, %v1285_v51, %v3534_v17  ;;  %v4568_v20 = vld [vmem:[#allocation56_spill] sm:$0xff]  ;;  %v2375_v51 = vld [vmem:[%s2525_s28 + $0x20] sm:$0xff] }
 0x188   : > { %v939_v35 = vpop.permute.xlu1 %938 }
 0x189   : > { %v3755_v0 = vpop.permute.xlu0 %874 }
 0x18a   : > { %886 = vrot.lane.b32.xlu1 %v4558_v43, %s2446_s6 }
 0x18b   : > { %854 = vrot.lane.b32.xlu0 %v4559_v61, %s2446_s6  ;;  %v1302_v61 = vsel %vm1299_vm5, %v1269_v34, %v3446_v44 }
 0x18c   : > { %v3761_v38 = vpop.permute.xlu1 %940  ;;  %v1335_v39 = vsel %vm1332_vm6, %v1302_v61, %v3620_v63  ;;  %v4571_v61 = vld [vmem:[#allocation68_spill] sm:$0xff] }
 0x18d   : > { %v971_v47 = vpop.permute.xlu0 %970 }
 0x18e   : > { %982 = vrot.lane.b32.xlu1 %v2368_v26, %s2447_s7  ;;  %v1351_v26 = vsel %vm1332_vm6, %v1318_v30, %v3660_v16  ;;  %v4570_v30 = vld [vmem:[#allocation40_spill] sm:$0xff] }
 0x18f   : > { %950 = vrot.lane.b32.xlu0 %v2369_v36, %s2447_s7 }
 0x190   : > { %v1041_v22 = vpop.permute.xlu1 %1040 }
 0x191   : > { %v973_v54 = vpop.permute.xlu0 %972 }
 0x192   : > { %984 = vrot.lane.b32.xlu1 %v2370_v57, %s2447_s7  ;;  %v1384_v57 = vsel %vm1365_vm7, %v1351_v26, %v873_v19 }
 0x193   : > { %952 = vrot.lane.b32.xlu0 %v2371_v6, %s2447_s7  ;;  %v1368_v6 = vsel %vm1365_vm7, %v1335_v39, %v3710_v60  ;;  %v1417_v17 = vsel %vm1398_vm8, %v1384_v57, %v971_v47  ;;  %v4565_v60 = vld [vmem:[#allocation28_spill] sm:$0xff]  ;;  %v4566_v47 = vld [vmem:[#allocation11_spill] sm:$0xff] }
 0x194   : > { %v3771_v24 = vpop.permute.xlu1 %775  ;;  %v1401_v44 = vsel %vm1398_vm8, %v1368_v6, %v939_v35 }
 0x195   : > { %v1073_v12 = vpop.permute.xlu0 %1072  ;;  %v1434_v19 = vsel %vm1431_vm9, %v1401_v44, %v1041_v22  ;;  %v3822_v22 = vld [vmem:[%s2525_s28 + $0xe0] sm:$0xff] }
 0x196   : > { %1084 = vrot.lane.b32.xlu1 %v4561_v49, %s2448_s17  ;;  %v1450_v16 = vsel %vm1431_vm9, %v1417_v17, %v1073_v12  ;;  %v1253_v9 = vsel %vm1233_vm2, %v3822_v22, %v4567_v33  ;;  %v2376_v33 = vld [vmem:[%s2525_s28 + $0x168] sm:$0xff] }
 0x197   : > { %1052 = vrot.lane.b32.xlu0 %v4563_v29, %s2448_s17  ;;  %v1286_v34 = vsel %vm1266_vm3, %v1253_v9, %v3317_v56  ;;  %v2377_v9 = vld [vmem:[%s2525_s28 + $0xa8] sm:$0xff] }
 0x198   : > { %v1075_v43 = vpop.permute.xlu1 %1074  ;;  %v1319_v39 = vsel %vm1299_vm5, %v1286_v34, %v3532_v1 }
 0x199   : > { %v1043_v36 = vpop.permute.xlu0 %1042  ;;  %v1352_v17 = vsel %vm1332_vm6, %v1319_v39, %v3714_v45 }
 0x19a   : > { %787 = vrot.lane.b32.xlu1 %v4561_v49, %s2445_s5 }
 0x19b   : > { %755 = vrot.lane.b32.xlu0 %v4563_v29, %s2445_s5  ;;  %v4569_v29 = vld [vmem:[#allocation55_spill] sm:$0xff] }
 0x19c   : > { %v1174_v63 = vpop.permute.xlu1 %1173  ;;  %v1237_v27 = vsel %vm1233_vm2, %v2375_v51, %v4569_v29  ;;  %v2378_v29 = vld [vmem:[%s2525_s28 + $0x170] sm:$0xff] }
 0x19d   : > { %v1483_v25 = vsel %vm1464_vm10, %v1450_v16, %v1174_v63  ;;  %v1142_v13 = vpop.permute.xlu0 %1141  ;;  %v1270_v26 = vsel %vm1266_vm3, %v1237_v27, %v4571_v61  ;;  %v1385_v16 = vsel %vm1365_vm7, %v1352_v17, %v3755_v0  ;;  %v2379_v27 = vld [vmem:[%s2525_s28 + $0xb0] sm:$0xff] }
 0x19e   : > { %v1467_v49 = vsel %vm1464_vm10, %v1434_v19, %v1142_v13  ;;  %1086 = vrot.lane.b32.xlu1 %v4565_v60, %s2448_s17  ;;  %2217 = vmatprep.mubr.msk.f32.mxu1 %vm1503_vm11, %v1483_v25  ;;  %v1303_v6 = vsel %vm1299_vm5, %v1270_v26, %v3444_v31  ;;  %v1418_v63 = vsel %vm1398_vm8, %v1385_v16, %v973_v54  ;;  %v4572_v54 = vld [vmem:[#allocation54_spill] sm:$0xff]  ;;  %v4574_v61 = vld [vmem:[#allocation31_spill] sm:$0xff] }
 0x19f   : > { %1054 = vrot.lane.b32.xlu0 %v4566_v47, %s2448_s17  ;;  %2193 = vmatprep.mubr.msk.f32.mxu0 %vm1503_vm11, %v1467_v49  ;;  %v1336_v56 = vsel %vm1332_vm6, %v1303_v6, %v3618_v46  ;;  %v1451_v45 = vsel %vm1431_vm9, %v1418_v63, %v1075_v43  ;;  %v4573_v43 = vld [vmem:[#allocation39_spill] sm:$0xff]  ;;  %v4575_v26 = vld [vmem:[#allocation14_spill] sm:$0xff]  ;;  %v1353_v6 = vsel %vm1332_vm6, %v3546_v8, %v3771_v24 }
 0x1a0   : > { %v3817_v35 = vpop.permute.xlu1 %777  ;;  %v1369_v1 = vsel %vm1365_vm7, %v1336_v56, %v3746_v14  ;;  %v1337_v56 = vsel %vm1332_vm6, %v3458_v62, %v3626_v52 }
 0x1a1   : > { %v3819_v12 = vpop.permute.xlu0 %745  ;;  %v1402_v31 = vsel %vm1398_vm8, %v1369_v1, %v3761_v38 }
 0x1a2   : > { %1185 = vrot.lane.b32.xlu1 %v4568_v20, %s2449_s29  ;;  %v1435_v19 = vsel %vm1431_vm9, %v1402_v31, %v1043_v36 }
 0x1a3   : > { %1153 = vrot.lane.b32.xlu0 %v4570_v30, %s2449_s29 }
 0x1a4   : > { %v877_v57 = vpop.permute.xlu1 %876 }
 0x1a5   : > { %v845_v44 = vpop.permute.xlu0 %844  ;;  %v1386_v16 = vsel %vm1365_vm7, %v1353_v6, %v877_v57 }
 0x1a6   : > { %789 = vrot.lane.b32.xlu1 %v4565_v60, %s2445_s5  ;;  %v1370_v1 = vsel %vm1365_vm7, %v1337_v56, %v845_v44  ;;  %v4577_v44 = vld [vmem:[#allocation13_spill] sm:$0xff]  ;;  %v730_v56 = vrot.slane %v3214_v5, 1 }
 0x1a7   : > { %757 = vrot.lane.b32.xlu0 %v4566_v47, %s2445_s5 }
 0x1a8   : > { %v1176_v46 = vpop.permute.xlu1 %1175 }
 0x1a9   : > { %v1484_v0 = vsel %vm1464_vm10, %v1451_v45, %v1176_v46  ;;  %v1144_v25 = vpop.permute.xlu0 %1143  ;;  %v4576_v46 = vld [vmem:[#allocation30_spill] sm:$0xff] }
 0x1aa   : > { %v1468_v13 = vsel %vm1464_vm10, %v1435_v19, %v1144_v25  ;;  %888 = vrot.lane.b32.xlu1 %v4568_v20, %s2446_s6  ;;  %2218 = vmatmul.mubr.msk.f32.gmra.mxu1 %vm1503_vm11, %v1484_v0  ;;  %v4578_v25 = vld [vmem:[#allocation59_spill] sm:$0xff] }
 0x1ab   : > { %856 = vrot.lane.b32.xlu0 %v4570_v30, %s2446_s6  ;;  %2194 = vmatmul.mubr.msk.f32.gmra.mxu0 %vm1503_vm11, %v1468_v13  ;;  %v4579_v13 = vld [vmem:[#allocation42_spill] sm:$0xff] }
 0x1ac   : > { %v879_v14 = vpop.permute.xlu1 %878 }
 0x1ad   : > { %v847_v38 = vpop.permute.xlu0 %846 }
 0x1ae   : > { %1187 = vrot.lane.b32.xlu1 %v4572_v54, %s2449_s29 }
 0x1af   : > { %1155 = vrot.lane.b32.xlu0 %v4573_v43, %s2449_s29 }
 0x1b0   : > { %v975_v36 = vpop.permute.xlu1 %974 }
 0x1b1   : > { %v943_v49 = vpop.permute.xlu0 %942  ;;  %v1419_v63 = vsel %vm1398_vm8, %v1386_v16, %v975_v36 }
 0x1b2   : > { %890 = vrot.lane.b32.xlu1 %v4572_v54, %s2446_s6  ;;  %v1403_v31 = vsel %vm1398_vm8, %v1370_v1, %v943_v49  ;;  %v1338_v49 = vsel %vm1332_vm6, %v3454_v37, %v3819_v12 }
 0x1b3   : > { %858 = vrot.lane.b32.xlu0 %v4573_v43, %s2446_s6  ;;  %v1354_v43 = vsel %vm1332_vm6, %v3542_v28, %v3817_v35 }
 0x1b4   : > { %v977_v60 = vpop.permute.xlu1 %976 }
 0x1b5   : > { %v945_v47 = vpop.permute.xlu0 %944 }
 0x1b6   : > { %986 = vrot.lane.b32.xlu1 %v2376_v33, %s2447_s7  ;;  %v1387_v33 = vsel %vm1365_vm7, %v1354_v43, %v879_v14 }
 0x1b7   : > { %954 = vrot.lane.b32.xlu0 %v2377_v9, %s2447_s7  ;;  %v1371_v9 = vsel %vm1365_vm7, %v1338_v49, %v847_v38 }
 0x1b8   : > { %v1077_v20 = vpop.permute.xlu1 %1076 }
 0x1b9   : > { %v1045_v51 = vpop.permute.xlu0 %1044  ;;  %v1452_v8 = vsel %vm1431_vm9, %v1419_v63, %v1077_v20  ;;  %v1420_v20 = vsel %vm1398_vm8, %v1387_v33, %v977_v60 }
 0x1ba   : > { %988 = vrot.lane.b32.xlu1 %v2378_v29, %s2447_s7  ;;  %v1436_v45 = vsel %vm1431_vm9, %v1403_v31, %v1045_v51  ;;  %v1404_v51 = vsel %vm1398_vm8, %v1371_v9, %v945_v47  ;;  %v4580_v47 = vld [vmem:[#allocation58_spill] sm:$0xff] }
 0x1bb   : > { %956 = vrot.lane.b32.xlu0 %v2379_v27, %s2447_s7  ;;  %v4581_v27 = vld [vmem:[#allocation41_spill] sm:$0xff] }
 0x1bc   : > { %v3883_v34 = vpop.permute.xlu1 %779 }
 0x1bd   : > { %v3885_v30 = vpop.permute.xlu0 %747 }
 0x1be   : > { %1088 = vrot.lane.b32.xlu1 %v4574_v61, %s2448_s17 }
 0x1bf   : > { %1056 = vrot.lane.b32.xlu0 %v4575_v26, %s2448_s17 }
 0x1c0   : > { %v1079_v39 = vpop.permute.xlu1 %1078 }
 0x1c1   : > { %v1047_v17 = vpop.permute.xlu0 %1046  ;;  %v1453_v28 = vsel %vm1431_vm9, %v1420_v20, %v1079_v39 }
 0x1c2   : > { %791 = vrot.lane.b32.xlu1 %v4574_v61, %s2445_s5  ;;  %v1437_v29 = vsel %vm1431_vm9, %v1404_v51, %v1047_v17  ;;  %v731_v17 = vrot.slane %v3208_v4, 1  ;;  %v4584_v51 = vld [vmem:[#allocation44_spill] sm:$0xff] }
 0x1c3   : > { %759 = vrot.lane.b32.xlu0 %v4575_v26, %s2445_s5 }
 0x1c4   : > { %v1178_v24 = vpop.permute.xlu1 %1177  ;;  %v732_v63 = vsel %vm277_vm0, %v730_v56, %v731_v17 }
 0x1c5   : > { %v1485_v62 = vsel %vm1464_vm10, %v1452_v8, %v1178_v24  ;;  %v1146_v52 = vpop.permute.xlu0 %1145  ;;  %v219_v8 = vld [vmem:[%s2525_s28 + $0x190] sm:$0x3] }
 0x1c6   : > { %v1469_v57 = vsel %vm1464_vm10, %v1436_v45, %v1146_v52  ;;  %1090 = vrot.lane.b32.xlu1 %v4576_v46, %s2448_s17  ;;  %2220 = vmatprep.mubr.msk.f32.mxu1 %vm1503_vm11, %v1485_v62  ;;  %v4582_v45 = vld [vmem:[#allocation16_spill] sm:$0xff]  ;;  %v1355_v52 = vsel %vm1332_vm6, %v3558_v11, %v3883_v34 }
 0x1c7   : > { %1058 = vrot.lane.b32.xlu0 %v4577_v44, %s2448_s17  ;;  %2196 = vmatprep.mubr.msk.f32.mxu0 %vm1503_vm11, %v1469_v57 }
 0x1c8   : > { %v3915_v19 = vpop.permute.xlu1 %781 }
 0x1c9   : > { %v3917_v0 = vpop.permute.xlu0 %749 }
 0x1ca   : > { %1189 = vrot.lane.b32.xlu1 %v4578_v25, %s2449_s29 }
 0x1cb   : > { %1157 = vrot.lane.b32.xlu0 %v4579_v13, %s2449_s29 }
 0x1cc   : > { %v881_v54 = vpop.permute.xlu1 %880 }
 0x1cd   : > { %v849_v36 = vpop.permute.xlu0 %848 }
 0x1ce   : > { %793 = vrot.lane.b32.xlu1 %v4576_v46, %s2445_s5  ;;  %v1339_v46 = vsel %vm1332_vm6, %v3470_v42, %v3885_v30 }
 0x1cf   : > { %761 = vrot.lane.b32.xlu0 %v4577_v44, %s2445_s5  ;;  %v1388_v44 = vsel %vm1365_vm7, %v1355_v52, %v881_v54 }
 0x1d0   : > { %v1180_v35 = vpop.permute.xlu1 %1179 }
 0x1d1   : > { %v1486_v37 = vsel %vm1464_vm10, %v1453_v28, %v1180_v35  ;;  %v1148_v12 = vpop.permute.xlu0 %1147  ;;  %v1356_v35 = vsel %vm1332_vm6, %v3554_v58, %v3915_v19 }
 0x1d2   : > { %v1470_v14 = vsel %vm1464_vm10, %v1437_v29, %v1148_v12  ;;  %892 = vrot.lane.b32.xlu1 %v4578_v25, %s2446_s6  ;;  %2221 = vmatmul.mubr.msk.f32.gmra.mxu1 %vm1503_vm11, %v1486_v37  ;;  %v831_v25 = vrot.slane %v3214_v5, 2  ;;  %v1340_v37 = vsel %vm1332_vm6, %v3466_v3, %v3917_v0 }
 0x1d3   : > { %860 = vrot.lane.b32.xlu0 %v4579_v13, %s2446_s6  ;;  %2197 = vmatmul.mubr.msk.f32.gmra.mxu0 %vm1503_vm11, %v1470_v14  ;;  %v1372_v13 = vsel %vm1365_vm7, %v1339_v46, %v849_v36  ;;  %v4583_v36 = vld [vmem:[#allocation15_spill] sm:$0xff] }
 0x1d4   : > { %v883_v38 = vpop.permute.xlu1 %882 }
 0x1d5   : > { %v851_v60 = vpop.permute.xlu0 %850  ;;  %v1389_v12 = vsel %vm1365_vm7, %v1356_v35, %v883_v38 }
 0x1d6   : > { %1191 = vrot.lane.b32.xlu1 %v4580_v47, %s2449_s29  ;;  %v1373_v14 = vsel %vm1365_vm7, %v1340_v37, %v851_v60 }
 0x1d7   : > { %1159 = vrot.lane.b32.xlu0 %v4581_v27, %s2449_s29 }
 0x1d8   : > { %v979_v61 = vpop.permute.xlu1 %978 }
 0x1d9   : > { %v947_v26 = vpop.permute.xlu0 %946  ;;  %v1421_v43 = vsel %vm1398_vm8, %v1388_v44, %v979_v61 }
 0x1da   : > { %894 = vrot.lane.b32.xlu1 %v4580_v47, %s2446_s6 }
 0x1db   : > { %862 = vrot.lane.b32.xlu0 %v4581_v27, %s2446_s6  ;;  %v834_v27 = vrot.slane %v219_v8, 2 }
 0x1dc   : > { %v981_v39 = vpop.permute.xlu1 %980 }
 0x1dd   : > { %v949_v6 = vpop.permute.xlu0 %948  ;;  %v1422_v47 = vsel %vm1398_vm8, %v1389_v12, %v981_v39 }
 0x1de   : > { %990 = vrot.lane.b32.xlu1 %v3214_v5, %s2447_s7  ;;  %v1406_v61 = vsel %vm1398_vm8, %v1373_v14, %v949_v6 }
 0x1df   : > { %958 = vrot.lane.b32.xlu0 %v3663_v48, %s2447_s7  ;;  %v733_v48 = vrot.slane %v219_v8, 1  ;;  %v221_v8 = vld [vmem:[%s2525_s28 + $0x1a0] sm:$0xff] }
 0x1e0   : > { %v1081_v16 = vpop.permute.xlu1 %1080 }
 0x1e1   : > { %v1049_v1 = vpop.permute.xlu0 %1048  ;;  %v734_v11 = vsel %vm277_vm0, %v731_v17, %v733_v48  ;;  %v1454_v34 = vsel %vm1431_vm9, %v1421_v43, %v1081_v16  ;;  %v4585_v17 = vld [vmem:[#allocation43_spill] sm:$0xff] }
 0x1e2   : > { %992 = vrot.lane.b32.xlu1 %v3208_v4, %s2447_s7 }
 0x1e3   : > { %960 = vrot.lane.b32.xlu0 %v3721_v10, %s2447_s7  ;;  %v832_v10 = vrot.slane %v3208_v4, 2  ;;  %v1405_v4 = vsel %vm1398_vm8, %v1372_v13, %v947_v26 }
 0x1e4   : > { %v3966_v31 = vpop.permute.xlu1 %783  ;;  %v1438_v30 = vsel %vm1431_vm9, %v1405_v4, %v1049_v1  ;;  %v220_v1 = vld [vmem:[%s2525_s28 + $0x198] sm:$0xff] }
 0x1e5   : > { %v3969_v24 = vpop.permute.xlu0 %751  ;;  %v833_v33 = vsel %vm454_vm1, %v831_v25, %v832_v10  ;;  %v835_v60 = vsel %vm454_vm1, %v832_v10, %v834_v27  ;;  %v1031_v48 = vrot.slane %v220_v1, 1  ;;  %v1132_v43 = vrot.slane %v220_v1, 2 }
 0x1e6   : > { %1092 = vrot.lane.b32.xlu1 %v732_v63, %s2448_s17 }
 0x1e7   : > { %1060 = vrot.lane.b32.xlu0 %v4582_v45, %s2448_s17 }
 0x1e8   : > { %v1083_v62 = vpop.permute.xlu1 %1082 }
 0x1e9   : > { %v1051_v57 = vpop.permute.xlu0 %1050  ;;  %v1455_v58 = vsel %vm1431_vm9, %v1422_v47, %v1083_v62  ;;  %v1032_v62 = vrot.slane %v221_v8, 1 }
 0x1ea   : > { %795 = vrot.lane.b32.xlu1 %v732_v63, %s2445_s5  ;;  %v1439_v26 = vsel %vm1431_vm9, %v1406_v61, %v1051_v57  ;;  %v222_v57 = vld [vmem:[%s2525_s28 + $0x1a8] sm:$0x3] }
 0x1eb   : > { %763 = vrot.lane.b32.xlu0 %v4582_v45, %s2445_s5  ;;  %v1033_v46 = vsel %vm277_vm0, %v1031_v48, %v1032_v62  ;;  %v1034_v44 = vrot.slane %v222_v57, 1 }
 0x1ec   : > { %v1182_v42 = vpop.permute.xlu1 %1181 }
 0x1ed   : > { %v1487_v54 = vsel %vm1464_vm10, %v1454_v34, %v1182_v42  ;;  %v1150_v49 = vpop.permute.xlu0 %1149  ;;  %v1341_v42 = vsel %vm1332_vm6, %v3482_v23, %v3969_v24 }
 0x1ee   : > { %v1471_v5 = vsel %vm1464_vm10, %v1438_v30, %v1150_v49  ;;  %1094 = vrot.lane.b32.xlu1 %v734_v11, %s2448_s17  ;;  %2223 = vmatprep.mubr.msk.f32.mxu1 %vm1503_vm11, %v1487_v54 }
 0x1ef   : > { %1062 = vrot.lane.b32.xlu0 %v4583_v36, %s2448_s17  ;;  %2199 = vmatprep.mubr.msk.f32.mxu0 %vm1503_vm11, %v1471_v5  ;;  %v1135_v5 = vrot.slane %v222_v57, 2 }
 0x1f0   : > { %v4000_v9 = vpop.permute.xlu1 %785 }
 0x1f1   : > { %v4002_v20 = vpop.permute.xlu0 %753  ;;  %v1358_v37 = vsel %vm1332_vm6, %v3566_v41, %v4000_v9 }
 0x1f2   : > { %1193 = vrot.lane.b32.xlu1 %v833_v33, %s2449_s29 }
 0x1f3   : > { %1161 = vrot.lane.b32.xlu0 %v4584_v51, %s2449_s29 }
 0x1f4   : > { %v885_v28 = vpop.permute.xlu1 %884 }
 0x1f5   : > { %v853_v29 = vpop.permute.xlu0 %852 }
 0x1f6   : > { %797 = vrot.lane.b32.xlu1 %v734_v11, %s2445_s5  ;;  %v1133_v11 = vrot.slane %v221_v8, 2  ;;  %v1374_v54 = vsel %vm1365_vm7, %v1341_v42, %v853_v29 }
 0x1f7   : > { %765 = vrot.lane.b32.xlu0 %v4583_v36, %s2445_s5  ;;  %s161_s5 = sand.u32 1, %s2432_s13  }
 0x1f8   : > { %v1184_v19 = vpop.permute.xlu1 %1183  ;;  %v1134_v49 = vsel %vm454_vm1, %v1132_v43, %v1133_v11  ;;  %s4301_s16 = scalar_lea.sflag [#allocation3], %s161_s5 }
 0x1f9   : > { %v1488_v3 = vsel %vm1464_vm10, %v1455_v58, %v1184_v19  ;;  %v1152_v0 = vpop.permute.xlu0 %1151 }
 0x1fa   : > { %v1472_v38 = vsel %vm1464_vm10, %v1439_v26, %v1152_v0  ;;  %896 = vrot.lane.b32.xlu1 %v833_v33, %s2446_s6  ;;  %2224 = vmatmul.mubr.msk.f32.gmra.mxu1 %vm1503_vm11, %v1488_v3 }
 0x1fb   : > { %864 = vrot.lane.b32.xlu0 %v4584_v51, %s2446_s6  ;;  %2200 = vmatmul.mubr.msk.f32.gmra.mxu0 %vm1503_vm11, %v1472_v38 }
 0x1fc   : > { %v887_v39 = vpop.permute.xlu1 %886 }
 0x1fd   : > { %v855_v6 = vpop.permute.xlu0 %854  ;;  %v1391_v14 = vsel %vm1365_vm7, %v1358_v37, %v887_v39 }
 0x1fe   : > { %1195 = vrot.lane.b32.xlu1 %v835_v60, %s2449_s29 }
 0x1ff   : > { %1163 = vrot.lane.b32.xlu0 %v4585_v17, %s2449_s29 }
 0x200   : > { %v983_v56 = vpop.permute.xlu1 %982 }
 0x201   : > { %v951_v16 = vpop.permute.xlu0 %950 }
 0x202   : > { %898 = vrot.lane.b32.xlu1 %v835_v60, %s2446_s6 }
 0x203   : > { %866 = vrot.lane.b32.xlu0 %v4585_v17, %s2446_s6  ;;  %s2101_s6 = sshll.u32 %s161_s5, 8 }
 0x204   : > { %v985_v63 = vpop.permute.xlu1 %984 }
 0x205   : > { %v953_v45 = vpop.permute.xlu0 %952  ;;  %v1424_v27 = vsel %vm1398_vm8, %v1391_v14, %v985_v63 }
 0x206   : > { %994 = vrot.lane.b32.xlu1 %v220_v1, %s2447_s7 }
 0x207   : > { %962 = vrot.lane.b32.xlu0 %v3774_v15, %s2447_s7  ;;  %v1035_v15 = vsel %vm277_vm0, %v1032_v62, %v1034_v44 }
 0x208   : > { %v1085_v52 = vpop.permute.xlu1 %1084 }
 0x209   : > { %v1053_v10 = vpop.permute.xlu0 %1052 }
 0x20a   : > { %996 = vrot.lane.b32.xlu1 %v221_v8, %s2447_s7 }
 0x20b   : > { %964 = vrot.lane.b32.xlu0 %v3822_v22, %s2447_s7  ;;  %v1357_v22 = vsel %vm1332_vm6, %v3570_v40, %v3966_v31  ;;  %v1407_v40 = vsel %vm1398_vm8, %v1374_v54, %v951_v16  ;;  %s4152_s7 = scalar_lea.vmem [#allocation2], %s2101_s6 }
 0x20c   : > { %v788_v25 = vpop.permute.xlu1 %787  ;;  %v1390_v30 = vsel %vm1365_vm7, %v1357_v22, %v885_v28  ;;  %v1440_v23 = vsel %vm1431_vm9, %v1407_v40, %v1053_v10  ;;  %s2035_s9 = sshll.u32 %s4152_s7, 4  ;;  %s4295_s9 = int_to_ptr.vmem [resolvable:$true] %s2035_s9 }
 0x20d   : > { %v4046_v13 = vpop.permute.xlu0 %755  ;;  %v1359_v1 = vsel %vm1332_vm6, %v3582_v2, %v788_v25  ;;  %s2380_s19 = scalar_lea.vmem %s4295_s9, 4096  ;;  %p2387_p0 = scmp.lt.s32.totalorder %s4295_s9, %s2385_s24 }
 0x20e   : > { %1096 = vrot.lane.b32.xlu1 %v1033_v46, %s2448_s17  ;;  %v1343_v8 = vsel %vm1332_vm6, %v3494_v55, %v4046_v13  ;;  %v4119_v13 = vld [vmem:[%s4344_s2] ss:$0 sm:$0xff]  ;;  %p2381_p11 = scmp.ne.s32.totalorder %s4295_s9, %s2380_s19  ;;  %p2388_p1 = scmp.lt.s32.totalorder %s2386_s25, %s2380_s19 }
 0x20f   : > { %1064 = vrot.lane.b32.xlu0 %v2746_v50, %s2448_s17  ;;  %v1423_v50 = vsel %vm1398_vm8, %v1390_v30, %v983_v56 }
 0x210   : > { %v1087_v4 = vpop.permute.xlu1 %1086  ;;  %v1456_v31 = vsel %vm1431_vm9, %v1423_v50, %v1085_v52  ;;  %p2382_p12 = pnand %p2381_p11, %p2510_p5  ;;  %p2389_p2 = por %p2388_p1, %p2387_p0 }
 0x211   : > { %v1055_v34 = vpop.permute.xlu0 %1054 }
 0x212   : > { %1098 = vrot.lane.b32.xlu1 %v1035_v15, %s2448_s17  ;;  %p2383_p13 = pneg %p2382_p12 }
 0x213   : > { %1066 = vrot.lane.b32.xlu0 %v4514_v21, %s2448_s17  ;;  %v1136_v21 = vsel %vm454_vm1, %v1133_v11, %v1135_v5  ;;  %s4292_s17 = scalar_lea.hbm %s4345_s3, %s2142_s8 }
 0x214   : > { %v1186_v36 = vpop.permute.xlu1 %1185  ;;  %p2390_p3 = pnand %p2389_p2, %p2383_p13 }
 0x215   : > { %v1489_v24 = vsel %vm1464_vm10, %v1456_v31, %v1186_v36  ;;  %v1154_v33 = vpop.permute.xlu0 %1153 }
 0x216   : > { %v1473_v51 = vsel %vm1464_vm10, %v1440_v23, %v1154_v33  ;;  %1197 = vrot.lane.b32.xlu1 %v1134_v49, %s2449_s29  ;;  %2226 = vmatprep.mubr.msk.f32.mxu1 %vm1503_vm11, %v1489_v24 }
 0x217   : > { %1165 = vrot.lane.b32.xlu0 %v2993_v18, %s2449_s29  ;;  %2202 = vmatprep.mubr.msk.f32.mxu0 %vm1503_vm11, %v1473_v51  ;;  %v1342_v18 = vsel %vm1332_vm6, %v3478_v59, %v4002_v20 }
 0x218   : > { %v790_v28 = vpop.permute.xlu1 %789  ;;  %v1375_v47 = vsel %vm1365_vm7, %v1342_v18, %v855_v6 }
 0x219   : > { %v758_v35 = vpop.permute.xlu0 %757  ;;  %v1408_v61 = vsel %vm1398_vm8, %v1375_v47, %v953_v45 }
 0x21a   : > { %1199 = vrot.lane.b32.xlu1 %v1136_v21, %s2449_s29  ;;  %v1441_v19 = vsel %vm1431_vm9, %v1408_v61, %v1055_v34  ;;  %v1360_v34 = vsel %vm1332_vm6, %v3578_v32, %v790_v28  ;;  %v1344_v50 = vsel %vm1332_vm6, %v3490_v53, %v758_v35 }
 0x21b   : > { %1167 = vrot.lane.b32.xlu0 %v2988_v7, %s2449_s29  ;;  %v1457_v7 = vsel %vm1431_vm9, %v1424_v27, %v1087_v4 }
 0x21c   : > { %v889_v29 = vpop.permute.xlu1 %888 }
 0x21d   : > { %v857_v12 = vpop.permute.xlu0 %856  ;;  %v1392_v45 = vsel %vm1365_vm7, %v1359_v1, %v889_v29 }
 0x21e   : > { %v1376_v48 = vsel %vm1365_vm7, %v1343_v8, %v857_v12 }
 0x220   : > { %v1188_v58 = vpop.permute.xlu1 %1187 }
 0x221   : > { %v1490_v41 = vsel %vm1464_vm10, %v1457_v7, %v1188_v58  ;;  %v1156_v9 = vpop.permute.xlu0 %1155 }
 0x222   : > { %v1474_v26 = vsel %vm1464_vm10, %v1441_v19, %v1156_v9  ;;  %2227 = vmatmul.mubr.msk.f32.gmra.mxu1 %vm1503_vm11, %v1490_v41 }
 0x223   : > { %2203 = vmatmul.mubr.msk.f32.gmra.mxu0 %vm1503_vm11, %v1474_v26 }
 0x224   : > { %v891_v59 = vpop.permute.xlu1 %890 }
 0x225   : > { %v859_v20 = vpop.permute.xlu0 %858  ;;  %v1393_v49 = vsel %vm1365_vm7, %v1360_v34, %v891_v59 }
 0x226   : > { %v1377_v5 = vsel %vm1365_vm7, %v1344_v50, %v859_v20 }
 0x228   : > { %v987_v3 = vpop.permute.xlu1 %986 }
 0x229   : > { %v955_v0 = vpop.permute.xlu0 %954  ;;  %v1425_v62 = vsel %vm1398_vm8, %v1392_v45, %v987_v3 }
 0x22a   : > { %v1409_v52 = vsel %vm1398_vm8, %v1376_v48, %v955_v0 }
 0x22c   : > { %v989_v38 = vpop.permute.xlu1 %988 }
 0x22d   : > { %v957_v60 = vpop.permute.xlu0 %956  ;;  %v1426_v40 = vsel %vm1398_vm8, %v1393_v49, %v989_v38 }
 0x22e   : > { %v1410_v23 = vsel %vm1398_vm8, %v1377_v5, %v957_v60 }
 0x230   : > { %v1089_v39 = vpop.permute.xlu1 %1088 }
 0x231   : > { %v1057_v6 = vpop.permute.xlu0 %1056  ;;  %v1458_v57 = vsel %vm1431_vm9, %v1425_v62, %v1089_v39 }
 0x232   : > { %v1442_v46 = vsel %vm1431_vm9, %v1409_v52, %v1057_v6 }
 0x234   : > { %v4095_v17 = vpop.permute.xlu1 %791 }
 0x235   : > { %v4097_v56 = vpop.permute.xlu0 %759 }
 0x238   : > { %v1091_v16 = vpop.permute.xlu1 %1090 }
 0x239   : > { %v1059_v63 = vpop.permute.xlu0 %1058  ;;  %v1459_v32 = vsel %vm1431_vm9, %v1426_v40, %v1091_v16 }
 0x23a   : > { %v1443_v51 = vsel %vm1431_vm9, %v1410_v23, %v1059_v63 }
 0x23c   : > { %v1190_v10 = vpop.permute.xlu1 %1189 }
 0x23d   : > { %v1491_v2 = vsel %vm1464_vm10, %v1458_v57, %v1190_v10  ;;  %v1158_v44 = vpop.permute.xlu0 %1157  ;;  %v4586_v57 = vld [vmem:[#allocation26_spill] sm:$0xff] }
 0x23e   : > { %v1475_v25 = vsel %vm1464_vm10, %v1442_v46, %v1158_v44  ;;  %2229 = vmatprep.mubr.msk.f32.mxu1 %vm1503_vm11, %v1491_v2  ;;  %v1361_v10 = vsel %vm1332_vm6, %v4586_v57, %v4095_v17  ;;  %v4587_v2 = vld [vmem:[#allocation17_spill] sm:$0xff] }
 0x23f   : > { %2205 = vmatprep.mubr.msk.f32.mxu0 %vm1503_vm11, %v1475_v25  ;;  %v1345_v44 = vsel %vm1332_vm6, %v4587_v2, %v4097_v56 }
 0x240   : > { %v4114_v55 = vpop.permute.xlu1 %793 }
 0x241   : > { %v4121_v43 = vpop.permute.xlu0 %761 }
 0x242   : > { %v2192_v11 = vpop.f32.mrf.mxu0 }
 0x243   : > { %v1676_v15 = vadd.f32 %v2192_v11, %v4119_v13 }
 0x244   : > { %v4124_v4 = vpop.permute.xlu1 %892  ;;  %v1670_v22 = vpop.f32.mrf.mxu0 }
 0x245   : > { %v1862_v42 = vmul.f32 0.70710677, %v1676_v15  ;;  %v1671_v30 = vadd.f32 %v4119_v13, %v1670_v22  ;;  %v4129_v54 = vpop.permute.xlu0 %860  ;;  %v1830_v58 = vmul.f32 0.5, %v1676_v15  ;;  %v1394_v25 = vsel %vm1365_vm7, %v1361_v10, %v4124_v4 }
 0x246   : > { %v1378_v11 = vsel %vm1365_vm7, %v1345_v44, %v4129_v54 }
 0x247   : > { %2297 = verf.f32 %v1862_v42  ;;  %v1861_v31 = vmul.f32 0.70710677, %v1671_v30  ;;  %v2216_v36 = vpop.f32.mrf.mxu1  ;;  %v1829_v59 = vmul.f32 0.5, %v1671_v30 }
 0x248   : > { %v1756_v24 = vadd.f32 %v2216_v36, %v4119_v13  ;;  %v1192_v33 = vpop.permute.xlu1 %1191 }
 0x249   : > { %2299 = verf.f32 %v1861_v31  ;;  %v1492_v53 = vsel %vm1464_vm10, %v1459_v32, %v1192_v33  ;;  %v1750_v21 = vpop.f32.mrf.mxu1  ;;  %v1160_v28 = vpop.permute.xlu0 %1159  ;;  %v4588_v32 = vld [vmem:[#allocation64_spill] sm:$0xff] }
 0x24a   : > { %v1878_v35 = vmul.f32 0.70710677, %v1756_v24  ;;  %v1751_v29 = vadd.f32 %v4119_v13, %v1750_v21  ;;  %v1476_v37 = vsel %vm1464_vm10, %v1443_v51, %v1160_v28  ;;  %2230 = vmatmul.mubr.msk.f32.gmra.mxu1 %vm1503_vm11, %v1492_v53  ;;  %v1846_v39 = vmul.f32 0.5, %v1756_v24  ;;  %v4589_v28 = vld [vmem:[#allocation6_spill] sm:$0xff] }
 0x24b   : > { %2206 = vmatmul.mubr.msk.f32.gmra.mxu0 %vm1503_vm11, %v1476_v37  ;;  %v1362_v24 = vsel %vm1332_vm6, %v4588_v32, %v4114_v55  ;;  %v4592_v32 = vld [vmem:[#allocation65_spill] sm:$0xff] }
 0x24c   : > { %2301 = verf.f32 %v1878_v35  ;;  %v1877_v12 = vmul.f32 0.70710677, %v1751_v29  ;;  %v4145_v18 = vpop.permute.xlu1 %894  ;;  %v1845_v63 = vmul.f32 0.5, %v1751_v29  ;;  %v1346_v35 = vsel %vm1332_vm6, %v4589_v28, %v4121_v43 }
 0x24d   : > { %v4147_v14 = vpop.permute.xlu0 %862  ;;  %v1395_v29 = vsel %vm1365_vm7, %v1362_v24, %v4145_v18 }
 0x24e   : > { %2303 = verf.f32 %v1877_v12 }
 0x250   : > { %v991_v47 = vpop.permute.xlu1 %990 }
 0x251   : > { %v959_v27 = vpop.permute.xlu0 %958  ;;  %v1427_v15 = vsel %vm1398_vm8, %v1394_v25, %v991_v47  ;;  %v1379_v47 = vsel %vm1365_vm7, %v1346_v35, %v4147_v14 }
 0x252   : > { %v1411_v22 = vsel %vm1398_vm8, %v1378_v11, %v959_v27 }
 0x254   : > { %v2298_v61 = vpop.eup %2297  ;;  %v993_v7 = vpop.permute.xlu1 %992 }
 0x255   : > { %v1926_v19 = vadd.f32 1.0, %v2298_v61  ;;  %v961_v41 = vpop.permute.xlu0 %960  ;;  %v1428_v55 = vsel %vm1398_vm8, %v1395_v29, %v993_v7 }
 0x256   : > { %v2300_v9 = vpop.eup %2299  ;;  %v1412_v61 = vsel %vm1398_vm8, %v1379_v47, %v961_v41 }
 0x257   : > { %v1958_v26 = vmul.f32 %v1926_v19, %v1830_v58  ;;  %v1925_v20 = vadd.f32 1.0, %v2300_v9 }
 0x258   : > { %v1093_v3 = vpop.permute.xlu1 %1092 }
 0x259   : > { %v2302_v0 = vpop.eup %2301  ;;  %1990 = vst [vmem:[%s4152_s7 + $0x8] sm:$0xff] %v1958_v26  ;;  %v1957_v38 = vmul.f32 %v1925_v20, %v1829_v59  ;;  %v1061_v60 = vpop.permute.xlu0 %1060  ;;  %v1460_v34 = vsel %vm1431_vm9, %v1427_v15, %v1093_v3 }
 0x25a   : > { %v1942_v6 = vadd.f32 1.0, %v2302_v0  ;;  %v1444_v17 = vsel %vm1431_vm9, %v1411_v22, %v1061_v60 }
 0x25b   : > { %v2304_v16 = vpop.eup %2303  ;;  %1989 = vst [vmem:[%s4152_s7] sm:$0xff] %v1957_v38 }
 0x25c   : > { %v1974_v1 = vmul.f32 %v1942_v6, %v1846_v39  ;;  %v1941_v8 = vadd.f32 1.0, %v2304_v16  ;;  %v4156_v45 = vpop.permute.xlu1 %795 }
 0x25d   : > { %v4158_v48 = vpop.permute.xlu0 %763 }
 0x25e   : > { %2006 = vst [vmem:[%s4152_s7 + $0x88] sm:$0xff] %v1974_v1  ;;  %v1973_v62 = vmul.f32 %v1941_v8, %v1845_v63 }
 0x260   : > { %2005 = vst [vmem:[%s4152_s7 + $0x80] sm:$0xff] %v1973_v62  ;;  %v1095_v52 = vpop.permute.xlu1 %1094 }
 0x261   : > { %v1063_v46 = vpop.permute.xlu0 %1062  ;;  %v1461_v58 = vsel %vm1431_vm9, %v1428_v55, %v1095_v52 }
 0x262   : > { %v1445_v9 = vsel %vm1431_vm9, %v1412_v61, %v1063_v46 }
 0x264   : > { %v1194_v42 = vpop.permute.xlu1 %1193 }
 0x265   : > { %v1493_v30 = vsel %vm1464_vm10, %v1460_v34, %v1194_v42  ;;  %v1162_v50 = vpop.permute.xlu0 %1161  ;;  %v4590_v34 = vld [vmem:[#allocation27_spill] sm:$0xff] }
 0x266   : > { %v1477_v56 = vsel %vm1464_vm10, %v1444_v17, %v1162_v50  ;;  %2232 = vmatprep.mubr.msk.f32.mxu1 %vm1503_vm11, %v1493_v30  ;;  %v1363_v42 = vsel %vm1332_vm6, %v4590_v34, %v4156_v45  ;;  %v4591_v30 = vld [vmem:[#allocation18_spill] sm:$0xff] }
 0x267   : > { %2208 = vmatprep.mubr.msk.f32.mxu0 %vm1503_vm11, %v1477_v56  ;;  %v1347_v50 = vsel %vm1332_vm6, %v4591_v30, %v4158_v48 }
 0x268   : > { %v4180_v4 = vpop.permute.xlu1 %797 }
 0x269   : > { %v4182_v54 = vpop.permute.xlu0 %765  ;;  %v1364_v45 = vsel %vm1332_vm6, %v4592_v32, %v4180_v4 }
 0x26a   : > { %v2219_v49 = vpop.f32.mrf.mxu1 }
 0x26b   : > { %v2195_v5 = vpop.f32.mrf.mxu0  ;;  %v1766_v40 = vadd.f32 %v2219_v49, %v4119_v13 }
 0x26c   : > { %v1686_v31 = vadd.f32 %v2195_v5, %v4119_v13  ;;  %v897_v36 = vpop.permute.xlu1 %896  ;;  %v1760_v23 = vpop.f32.mrf.mxu1 }
 0x26d   : > { %v1880_v33 = vmul.f32 0.70710677, %v1766_v40  ;;  %v1680_v51 = vpop.f32.mrf.mxu0  ;;  %v1761_v53 = vadd.f32 %v4119_v13, %v1760_v23  ;;  %v865_v21 = vpop.permute.xlu0 %864  ;;  %v1848_v60 = vmul.f32 0.5, %v1766_v40  ;;  %v1396_v56 = vsel %vm1365_vm7, %v1363_v42, %v897_v36  ;;  %v4593_v36 = vld [vmem:[#allocation19_spill] sm:$0xff] }
 0x26e   : > { %v1864_v37 = vmul.f32 0.70710677, %v1686_v31  ;;  %v1681_v12 = vadd.f32 %v4119_v13, %v1680_v51  ;;  %v1832_v1 = vmul.f32 0.5, %v1686_v31  ;;  %v1380_v49 = vsel %vm1365_vm7, %v1347_v50, %v865_v21 }
 0x26f   : > { %2305 = verf.f32 %v1880_v33  ;;  %v1879_v27 = vmul.f32 0.70710677, %v1761_v53  ;;  %v1847_v52 = vmul.f32 0.5, %v1761_v53  ;;  %v1348_v51 = vsel %vm1332_vm6, %v4593_v36, %v4182_v54 }
 0x270   : > { %2307 = verf.f32 %v1864_v37  ;;  %v1863_v19 = vmul.f32 0.70710677, %v1681_v12  ;;  %v1196_v43 = vpop.permute.xlu1 %1195  ;;  %v1831_v46 = vmul.f32 0.5, %v1681_v12 }
 0x271   : > { %2309 = verf.f32 %v1879_v27  ;;  %v1494_v18 = vsel %vm1464_vm10, %v1461_v58, %v1196_v43  ;;  %v1164_v26 = vpop.permute.xlu0 %1163 }
 0x272   : > { %2311 = verf.f32 %v1863_v19  ;;  %v1478_v14 = vsel %vm1464_vm10, %v1445_v9, %v1164_v26  ;;  %2233 = vmatmul.mubr.msk.f32.gmra.mxu1 %vm1503_vm11, %v1494_v18 }
 0x273   : > { %2209 = vmatmul.mubr.msk.f32.gmra.mxu0 %vm1503_vm11, %v1478_v14 }
 0x274   : > { %v899_v7 = vpop.permute.xlu1 %898 }
 0x275   : > { %v867_v41 = vpop.permute.xlu0 %866  ;;  %v1397_v53 = vsel %vm1365_vm7, %v1364_v45, %v899_v7 }
 0x276   : > { %v1381_v28 = vsel %vm1365_vm7, %v1348_v51, %v867_v41 }
 0x278   : > { %v995_v59 = vpop.permute.xlu1 %994 }
 0x279   : > { %v963_v20 = vpop.permute.xlu0 %962  ;;  %v1429_v5 = vsel %vm1398_vm8, %v1396_v56, %v995_v59 }
 0x27a   : > { %v1413_v40 = vsel %vm1398_vm8, %v1380_v49, %v963_v20 }
 0x27c   : > { %v2306_v3 = vpop.eup %2305  ;;  %v997_v0 = vpop.permute.xlu1 %996 }
 0x27d   : > { %v2308_v38 = vpop.eup %2307  ;;  %v1944_v39 = vadd.f32 1.0, %v2306_v3  ;;  %v965_v6 = vpop.permute.xlu0 %964  ;;  %v1430_v35 = vsel %vm1398_vm8, %v1397_v53, %v997_v0 }
 0x27e   : > { %v2310_v16 = vpop.eup %2309  ;;  %v1928_v63 = vadd.f32 1.0, %v2308_v38  ;;  %v1414_v4 = vsel %vm1398_vm8, %v1381_v28, %v965_v6 }
 0x27f   : > { %v2312_v8 = vpop.eup %2311  ;;  %v1976_v62 = vmul.f32 %v1944_v39, %v1848_v60  ;;  %v1943_v57 = vadd.f32 1.0, %v2310_v16 }
 0x280   : > { %v1960_v10 = vmul.f32 %v1928_v63, %v1832_v1  ;;  %v1927_v2 = vadd.f32 1.0, %v2312_v8  ;;  %v1097_v44 = vpop.permute.xlu1 %1096 }
 0x281   : > { %2008 = vst [vmem:[%s4152_s7 + $0x98] sm:$0xff] %v1976_v62  ;;  %v1975_v25 = vmul.f32 %v1943_v57, %v1847_v52  ;;  %v1065_v11 = vpop.permute.xlu0 %1064  ;;  %v1462_v31 = vsel %vm1431_vm9, %v1429_v5, %v1097_v44 }
 0x282   : > { %1992 = vst [vmem:[%s4152_s7 + $0x18] sm:$0xff] %v1960_v10  ;;  %v1959_v15 = vmul.f32 %v1927_v2, %v1831_v46  ;;  %v1446_v24 = vsel %vm1431_vm9, %v1413_v40, %v1065_v11 }
 0x283   : > { %2007 = vst [vmem:[%s4152_s7 + $0x90] sm:$0xff] %v1975_v25 }
 0x284   : > { %1991 = vst [vmem:[%s4152_s7 + $0x10] sm:$0xff] %v1959_v15  ;;  %v1099_v22 = vpop.permute.xlu1 %1098 }
 0x285   : > { %v1067_v17 = vpop.permute.xlu0 %1066  ;;  %v1463_v29 = vsel %vm1431_vm9, %v1430_v35, %v1099_v22 }
 0x286   : > { %v1447_v12 = vsel %vm1431_vm9, %v1414_v4, %v1067_v17 }
 0x288   : > { %v1198_v23 = vpop.permute.xlu1 %1197 }
 0x289   : > { %v1495_v33 = vsel %vm1464_vm10, %v1462_v31, %v1198_v23  ;;  %v1166_v48 = vpop.permute.xlu0 %1165 }
 0x28a   : > { %v1479_v21 = vsel %vm1464_vm10, %v1446_v24, %v1166_v48  ;;  %2235 = vmatprep.mubr.msk.f32.mxu1 %vm1503_vm11, %v1495_v33 }
 0x28b   : > { %2211 = vmatprep.mubr.msk.f32.mxu0 %vm1503_vm11, %v1479_v21 }
 0x28c   : > { %v1200_v37 = vpop.permute.xlu1 %1199 }
 0x28d   : > { %v1496_v54 = vsel %vm1464_vm10, %v1463_v29, %v1200_v37  ;;  %v1168_v47 = vpop.permute.xlu0 %1167 }
 0x28e   : > { %v1480_v55 = vsel %vm1464_vm10, %v1447_v12, %v1168_v47  ;;  %2236 = vmatmul.mubr.msk.f32.gmra.mxu1 %vm1503_vm11, %v1496_v54 }
 0x28f   : > { %2212 = vmatmul.mubr.msk.f32.gmra.mxu0 %vm1503_vm11, %v1480_v55 }
 0x292   : > { %v2222_v27 = vpop.f32.mrf.mxu1 }
 0x293   : > { %v2198_v61 = vpop.f32.mrf.mxu0  ;;  %v1776_v58 = vadd.f32 %v2222_v27, %v4119_v13 }
 0x294   : > { %v1696_v19 = vadd.f32 %v2198_v61, %v4119_v13  ;;  %v1770_v43 = vpop.f32.mrf.mxu1 }
 0x295   : > { %v1882_v9 = vmul.f32 0.70710677, %v1776_v58  ;;  %v1690_v18 = vpop.f32.mrf.mxu0  ;;  %v1771_v26 = vadd.f32 %v4119_v13, %v1770_v43  ;;  %v1850_v0 = vmul.f32 0.5, %v1776_v58 }
 0x296   : > { %v1866_v14 = vmul.f32 0.70710677, %v1696_v19  ;;  %v1691_v7 = vadd.f32 %v4119_v13, %v1690_v18  ;;  %v1834_v39 = vmul.f32 0.5, %v1696_v19 }
 0x297   : > { %2313 = verf.f32 %v1882_v9  ;;  %v1881_v41 = vmul.f32 0.70710677, %v1771_v26  ;;  %v1849_v63 = vmul.f32 0.5, %v1771_v26 }
 0x298   : > { %2315 = verf.f32 %v1866_v14  ;;  %v1865_v59 = vmul.f32 0.70710677, %v1691_v7  ;;  %v1833_v52 = vmul.f32 0.5, %v1691_v7 }
 0x299   : > { %2317 = verf.f32 %v1881_v41 }
 0x29a   : > { %2319 = verf.f32 %v1865_v59 }
 0x2a4   : > { %v2314_v20 = vpop.eup %2313 }
 0x2a5   : > { %v2316_v3 = vpop.eup %2315  ;;  %v1946_v38 = vadd.f32 1.0, %v2314_v20 }
 0x2a6   : > { %v2318_v60 = vpop.eup %2317  ;;  %v1930_v6 = vadd.f32 1.0, %v2316_v3 }
 0x2a7   : > { %v2320_v16 = vpop.eup %2319  ;;  %v1978_v1 = vmul.f32 %v1946_v38, %v1850_v0  ;;  %v1945_v8 = vadd.f32 1.0, %v2318_v60 }
 0x2a8   : > { %v1962_v62 = vmul.f32 %v1930_v6, %v1834_v39  ;;  %v1929_v57 = vadd.f32 1.0, %v2320_v16 }
 0x2a9   : > { %2010 = vst [vmem:[%s4152_s7 + $0xa8] sm:$0xff] %v1978_v1  ;;  %v1977_v10 = vmul.f32 %v1945_v8, %v1849_v63 }
 0x2aa   : > { %1994 = vst [vmem:[%s4152_s7 + $0x28] sm:$0xff] %v1962_v62  ;;  %v1961_v46 = vmul.f32 %v1929_v57, %v1833_v52 }
 0x2ab   : > { %2009 = vst [vmem:[%s4152_s7 + $0xa0] sm:$0xff] %v1977_v10 }
 0x2ac   : > { %1993 = vst [vmem:[%s4152_s7 + $0x20] sm:$0xff] %v1961_v46 }
 0x2ba   : > { %v2225_v2 = vpop.f32.mrf.mxu1 }
 0x2bb   : > { %v2201_v44 = vpop.f32.mrf.mxu0  ;;  %v1786_v25 = vadd.f32 %v2225_v2, %v4119_v13 }
 0x2bc   : > { %v1706_v11 = vadd.f32 %v2201_v44, %v4119_v13  ;;  %v1780_v15 = vpop.f32.mrf.mxu1 }
 0x2bd   : > { %v1884_v22 = vmul.f32 0.70710677, %v1786_v25  ;;  %v1700_v34 = vpop.f32.mrf.mxu0  ;;  %v1781_v42 = vadd.f32 %v4119_v13, %v1780_v15  ;;  %v1852_v40 = vmul.f32 0.5, %v1786_v25 }
 0x2be   : > { %v1868_v17 = vmul.f32 0.70710677, %v1706_v11  ;;  %v1701_v30 = vadd.f32 %v4119_v13, %v1700_v34  ;;  %v1836_v32 = vmul.f32 0.5, %v1706_v11 }
 0x2bf   : > { %2321 = verf.f32 %v1884_v22  ;;  %v1883_v50 = vmul.f32 0.70710677, %v1781_v42  ;;  %v1851_v48 = vmul.f32 0.5, %v1781_v42 }
 0x2c0   : > { %2323 = verf.f32 %v1868_v17  ;;  %v1867_v56 = vmul.f32 0.70710677, %v1701_v30  ;;  %v1835_v53 = vmul.f32 0.5, %v1701_v30 }
 0x2c1   : > { %2325 = verf.f32 %v1883_v50 }
 0x2c2   : > { %2327 = verf.f32 %v1867_v56 }
 0x2cc   : > { %v2322_v49 = vpop.eup %2321 }
 0x2cd   : > { %v2324_v5 = vpop.eup %2323  ;;  %v1948_v31 = vadd.f32 1.0, %v2322_v49 }
 0x2ce   : > { %v2326_v23 = vpop.eup %2325  ;;  %v1932_v45 = vadd.f32 1.0, %v2324_v5 }
 0x2cf   : > { %v2328_v24 = vpop.eup %2327  ;;  %v1980_v33 = vmul.f32 %v1948_v31, %v1852_v40  ;;  %v1947_v36 = vadd.f32 1.0, %v2326_v23 }
 0x2d0   : > { %v1964_v51 = vmul.f32 %v1932_v45, %v1836_v32  ;;  %v1931_v21 = vadd.f32 1.0, %v2328_v24 }
 0x2d1   : > { %2012 = vst [vmem:[%s4152_s7 + $0xb8] sm:$0xff] %v1980_v33  ;;  %v1979_v28 = vmul.f32 %v1947_v36, %v1851_v48 }
 0x2d2   : > { %1996 = vst [vmem:[%s4152_s7 + $0x38] sm:$0xff] %v1964_v51  ;;  %v1963_v35 = vmul.f32 %v1931_v21, %v1835_v53 }
 0x2d3   : > { %2011 = vst [vmem:[%s4152_s7 + $0xb0] sm:$0xff] %v1979_v28 }
 0x2d4   : > { %1995 = vst [vmem:[%s4152_s7 + $0x30] sm:$0xff] %v1963_v35 }
 0x2e2   : > { %v2228_v4 = vpop.f32.mrf.mxu1 }
 0x2e3   : > { %v2204_v29 = vpop.f32.mrf.mxu0  ;;  %v1796_v37 = vadd.f32 %v2228_v4, %v4119_v13 }
 0x2e4   : > { %v1716_v12 = vadd.f32 %v2204_v29, %v4119_v13  ;;  %v1790_v54 = vpop.f32.mrf.mxu1 }
 0x2e5   : > { %v1886_v47 = vmul.f32 0.70710677, %v1796_v37  ;;  %v1710_v55 = vpop.f32.mrf.mxu0  ;;  %v1791_v27 = vadd.f32 %v4119_v13, %v1790_v54  ;;  %v1854_v26 = vmul.f32 0.5, %v1796_v37 }
 0x2e6   : > { %v1870_v61 = vmul.f32 0.70710677, %v1716_v12  ;;  %v1711_v58 = vadd.f32 %v4119_v13, %v1710_v55  ;;  %v1838_v41 = vmul.f32 0.5, %v1716_v12 }
 0x2e7   : > { %2329 = verf.f32 %v1886_v47  ;;  %v1885_v19 = vmul.f32 0.70710677, %v1791_v27  ;;  %v1853_v0 = vmul.f32 0.5, %v1791_v27 }
 0x2e8   : > { %2331 = verf.f32 %v1870_v61  ;;  %v1869_v43 = vmul.f32 0.70710677, %v1711_v58  ;;  %v1837_v39 = vmul.f32 0.5, %v1711_v58 }
 0x2e9   : > { %2333 = verf.f32 %v1885_v19 }
 0x2ea   : > { %2335 = verf.f32 %v1869_v43 }
 0x2f4   : > { %v2330_v9 = vpop.eup %2329 }
 0x2f5   : > { %v2332_v18 = vpop.eup %2331  ;;  %v1950_v14 = vadd.f32 1.0, %v2330_v9 }
 0x2f6   : > { %v2334_v7 = vpop.eup %2333  ;;  %v1934_v59 = vadd.f32 1.0, %v2332_v18 }
 0x2f7   : > { %v2336_v20 = vpop.eup %2335  ;;  %v1982_v3 = vmul.f32 %v1950_v14, %v1854_v26  ;;  %v1949_v38 = vadd.f32 1.0, %v2334_v7 }
 0x2f8   : > { %v1966_v60 = vmul.f32 %v1934_v59, %v1838_v41  ;;  %v1933_v6 = vadd.f32 1.0, %v2336_v20 }
 0x2f9   : > { %2014 = vst [vmem:[%s4152_s7 + $0xc8] sm:$0xff] %v1982_v3  ;;  %v1981_v16 = vmul.f32 %v1949_v38, %v1853_v0 }
 0x2fa   : > { %1998 = vst [vmem:[%s4152_s7 + $0x48] sm:$0xff] %v1966_v60  ;;  %v1965_v1 = vmul.f32 %v1933_v6, %v1837_v39 }
 0x2fb   : > { %2013 = vst [vmem:[%s4152_s7 + $0xc0] sm:$0xff] %v1981_v16 }
 0x2fc   : > { %1997 = vst [vmem:[%s4152_s7 + $0x40] sm:$0xff] %v1965_v1 }
 0x30a   : > { %v2231_v63 = vpop.f32.mrf.mxu1 }
 0x30b   : > { %v2207_v8 = vpop.f32.mrf.mxu0  ;;  %v1806_v62 = vadd.f32 %v2231_v63, %v4119_v13 }
 0x30c   : > { %v1726_v52 = vadd.f32 %v2207_v8, %v4119_v13  ;;  %v1800_v57 = vpop.f32.mrf.mxu1 }
 0x30d   : > { %v1888_v10 = vmul.f32 0.70710677, %v1806_v62  ;;  %v1720_v46 = vpop.f32.mrf.mxu0  ;;  %v1801_v2 = vadd.f32 %v4119_v13, %v1800_v57  ;;  %v1856_v42 = vmul.f32 0.5, %v1806_v62 }
 0x30e   : > { %v1872_v44 = vmul.f32 0.70710677, %v1726_v52  ;;  %v1721_v25 = vadd.f32 %v4119_v13, %v1720_v46  ;;  %v1840_v50 = vmul.f32 0.5, %v1726_v52 }
 0x30f   : > { %2337 = verf.f32 %v1888_v10  ;;  %v1887_v11 = vmul.f32 0.70710677, %v1801_v2  ;;  %v1855_v40 = vmul.f32 0.5, %v1801_v2 }
 0x310   : > { %2339 = verf.f32 %v1872_v44  ;;  %v1871_v15 = vmul.f32 0.70710677, %v1721_v25  ;;  %v1839_v32 = vmul.f32 0.5, %v1721_v25 }
 0x311   : > { %2341 = verf.f32 %v1887_v11 }
 0x312   : > { %2343 = verf.f32 %v1871_v15 }
 0x31c   : > { %v2338_v22 = vpop.eup %2337 }
 0x31d   : > { %v2340_v34 = vpop.eup %2339  ;;  %v1952_v17 = vadd.f32 1.0, %v2338_v22 }
 0x31e   : > { %v2342_v30 = vpop.eup %2341  ;;  %v1936_v56 = vadd.f32 1.0, %v2340_v34 }
 0x31f   : > { %v2344_v49 = vpop.eup %2343  ;;  %v1984_v5 = vmul.f32 %v1952_v17, %v1856_v42  ;;  %v1951_v31 = vadd.f32 1.0, %v2342_v30 }
 0x320   : > { %v1968_v23 = vmul.f32 %v1936_v56, %v1840_v50  ;;  %v1935_v45 = vadd.f32 1.0, %v2344_v49 }
 0x321   : > { %2016 = vst [vmem:[%s4152_s7 + $0xd8] sm:$0xff] %v1984_v5  ;;  %v1983_v24 = vmul.f32 %v1951_v31, %v1855_v40 }
 0x322   : > { %2000 = vst [vmem:[%s4152_s7 + $0x58] sm:$0xff] %v1968_v23  ;;  %v1967_v33 = vmul.f32 %v1935_v45, %v1839_v32 }
 0x323   : > { %2015 = vst [vmem:[%s4152_s7 + $0xd0] sm:$0xff] %v1983_v24 }
 0x324   : > { %1999 = vst [vmem:[%s4152_s7 + $0x50] sm:$0xff] %v1967_v33 }
 0x332   : > { %v2234_v48 = vpop.f32.mrf.mxu1 }
 0x333   : > { %v2210_v36 = vpop.f32.mrf.mxu0  ;;  %v1816_v51 = vadd.f32 %v2234_v48, %v4119_v13 }
 0x334   : > { %v1736_v53 = vadd.f32 %v2210_v36, %v4119_v13  ;;  %v1810_v21 = vpop.f32.mrf.mxu1 }
 0x335   : > { %v1890_v28 = vmul.f32 0.70710677, %v1816_v51  ;;  %v1730_v35 = vpop.f32.mrf.mxu0  ;;  %v1811_v4 = vadd.f32 %v4119_v13, %v1810_v21  ;;  %v1858_v27 = vmul.f32 0.5, %v1816_v51 }
 0x336   : > { %v1874_v29 = vmul.f32 0.70710677, %v1736_v53  ;;  %v1731_v37 = vadd.f32 %v4119_v13, %v1730_v35  ;;  %v1842_v19 = vmul.f32 0.5, %v1736_v53 }
 0x337   : > { %2345 = verf.f32 %v1890_v28  ;;  %v1889_v12 = vmul.f32 0.70710677, %v1811_v4  ;;  %v1857_v26 = vmul.f32 0.5, %v1811_v4 }
 0x338   : > { %2347 = verf.f32 %v1874_v29  ;;  %v1873_v54 = vmul.f32 0.70710677, %v1731_v37  ;;  %v1841_v41 = vmul.f32 0.5, %v1731_v37 }
 0x339   : > { %2349 = verf.f32 %v1889_v12 }
 0x33a   : > { %2351 = verf.f32 %v1873_v54 }
 0x344   : > { %v2346_v47 = vpop.eup %2345 }
 0x345   : > { %v2348_v55 = vpop.eup %2347  ;;  %v1954_v61 = vadd.f32 1.0, %v2346_v47 }
 0x346   : > { %v2350_v58 = vpop.eup %2349  ;;  %v1938_v43 = vadd.f32 1.0, %v2348_v55 }
 0x347   : > { %v2352_v9 = vpop.eup %2351  ;;  %v1986_v18 = vmul.f32 %v1954_v61, %v1858_v27  ;;  %v1953_v14 = vadd.f32 1.0, %v2350_v58 }
 0x348   : > { %v1970_v7 = vmul.f32 %v1938_v43, %v1842_v19  ;;  %v1937_v59 = vadd.f32 1.0, %v2352_v9 }
 0x349   : > { %2018 = vst [vmem:[%s4152_s7 + $0xe8] sm:$0xff] %v1986_v18  ;;  %v1985_v20 = vmul.f32 %v1953_v14, %v1857_v26 }
 0x34a   : > { %2002 = vst [vmem:[%s4152_s7 + $0x68] sm:$0xff] %v1970_v7  ;;  %v1969_v3 = vmul.f32 %v1937_v59, %v1841_v41 }
 0x34b   : > { %2017 = vst [vmem:[%s4152_s7 + $0xe0] sm:$0xff] %v1985_v20 }
 0x34c   : > { %2001 = vst [vmem:[%s4152_s7 + $0x60] sm:$0xff] %v1969_v3 }
 0x34e   : > { %v2237_v0 = vpop.f32.mrf.mxu1 }
 0x34f   : > { %v2213_v38 = vpop.f32.mrf.mxu0  ;;  %v1826_v60 = vadd.f32 %v2237_v0, %v4119_v13 }
 0x350   : > { %v1746_v39 = vadd.f32 %v2213_v38, %v4119_v13  ;;  %v1820_v6 = vpop.f32.mrf.mxu1 }
 0x351   : > { %v1892_v16 = vmul.f32 0.70710677, %v1826_v60  ;;  %v1740_v1 = vpop.f32.mrf.mxu0  ;;  %v1821_v63 = vadd.f32 %v4119_v13, %v1820_v6  ;;  %v1860_v2 = vmul.f32 0.5, %v1826_v60 }
 0x352   : > { %v1876_v8 = vmul.f32 0.70710677, %v1746_v39  ;;  %v1741_v62 = vadd.f32 %v4119_v13, %v1740_v1  ;;  %v1844_v11 = vmul.f32 0.5, %v1746_v39 }
 0x353   : > { %2353 = verf.f32 %v1892_v16  ;;  %v1891_v52 = vmul.f32 0.70710677, %v1821_v63  ;;  %v1859_v34 = vmul.f32 0.5, %v1821_v63 }
 0x354   : > { %2355 = verf.f32 %v1876_v8  ;;  %v1875_v57 = vmul.f32 0.70710677, %v1741_v62  ;;  %v1843_v30 = vmul.f32 0.5, %v1741_v62 }
 0x355   : > { %2357 = verf.f32 %v1891_v52 }
 0x356   : > { %2359 = verf.f32 %v1875_v57 }
 0x360   : > { %v2354_v10 = vpop.eup %2353 }
 0x361   : > { %v2356_v46 = vpop.eup %2355  ;;  %v1956_v44 = vadd.f32 1.0, %v2354_v10 }
 0x362   : > { %v2358_v25 = vpop.eup %2357  ;;  %v1940_v15 = vadd.f32 1.0, %v2356_v46 }
 0x363   : > { %v2360_v13 = vpop.eup %2359  ;;  %v1988_v22 = vmul.f32 %v1956_v44, %v1860_v2  ;;  %v1955_v42 = vadd.f32 1.0, %v2358_v25 }
 0x364   : > { %v1972_v17 = vmul.f32 %v1940_v15, %v1844_v11  ;;  %v1939_v50 = vadd.f32 1.0, %v2360_v13 }
 0x365   : > { %2020 = vst [vmem:[%s4152_s7 + $0xf8] sm:$0xff] %v1988_v22  ;;  %v1987_v56 = vmul.f32 %v1955_v42, %v1859_v34 }
 0x366   : > { %2004 = vst [vmem:[%s4152_s7 + $0x78] sm:$0xff] %v1972_v17  ;;  %v1971_v49 = vmul.f32 %v1939_v50, %v1843_v30 }
 0x367   : > { %2019 = vst [vmem:[%s4152_s7 + $0xf0] sm:$0xff] %v1987_v56 }
 0x368   : > { %2003 = vst [vmem:[%s4152_s7 + $0x70] sm:$0xff] %v1971_v49 }
 0x369   : > { %2393 = shalt.err (!%p2390_p3)
}
 0x36a   : > { %s2394_s26 = scalar_lea.hbm %s4292_s17, 4096  ;;  %s2398_s28 = scalar_lea.hbm %s4345_s3, 8192 }
 0x36b   : > { %p2395_p4 = scmp.ne.s32.totalorder %s4292_s17, %s2394_s26  ;;  %p2399_p9 = scmp.lt.s32.totalorder %s4292_s17, %s4345_s3 }
 0x36c   : > { %p2400_p10 = scmp.lt.s32.totalorder %s2398_s28, %s2394_s26 }
 0x36d   : > { %p2396_p7 = pnand %p2395_p4, %p2510_p5 }
 0x36e   : > { %p2401_p11 = por %p2400_p10, %p2399_p9 }
 0x36f   : > { %p2397_p8 = pneg %p2396_p7 }
 0x371   : > { %p2402_p12 = pnand %p2401_p11, %p2397_p8 }
 0x373   : > { %2405 = shalt.err (!%p2402_p12)
}
 0x374   : > { %s2451_s6 = smov 128  }
 0x375   : > { %2249 = dma.vmem_to_hbm [thread:$0]  (%p2510_p5), %s4295_s9, 4096, %s4292_s17, %s4301_s16, %s2451_s6, %s2451_s6, %s2443_s30  }
 0x376 PF: > { %p2255_p13 = scmp.ge.s32.totalorder %s2440_s15, 2  ;;  %s2050_s7 = sand.u32 1, %s2428_s12  }
 0x377   : > { %s2051_s8 = scalar_lea.sflag [#allocation3], %s2050_s7 }
 0x378   : > { %p2252_p0 = pnand %p2255_p13, %p2514_p6 }
 0x37a   : > { %p2253_p1 = pneg %p2252_p0 }
 0x37c   : > { %2423 = dma.done.wait (%p2253_p1), %s2051_s8, 4096  }
 0x37d   : > { %2425 = vsyncadd (%p2253_p1), %s2051_s8, 4294963200  ;;  %p13_p2 = scmp.ge.s32.totalorder %s2497_s18, 4   ;;  %s4594_s12 = smov %s2432_s13 }
 0x37e   : > { %s4595_s13 = smov %s2436_s14  ;;  %s4596_s14 = smov %s2508_s21 }
 0x37f   : > { %s4597_s15 = smov %s2497_s18  ;;  %15 = sbr.rel (!%p13_p2) target bundleno = 3 (0x3), region = 67 }
 0x384   :  { %2056 = vsyncpa [#allocation3], 1 }
 0x385   :  { %2058 = vsyncpa [#allocation3 + $0x1], 1 }

</bundles_post_ra>
